<compile_context>
chip_gen: v6e
topology: v6e:2x2x1
jax: 0.10.0
libtpu: 0.0.40
codegen_flags: <defaults>
</compile_context>

<pallas_src>
import jax
import jax.numpy as jnp
from jax.experimental import pallas as pl
from jax.experimental.pallas import tpu as pltpu


def _linear_gelu_kernel(x_ref, wt_ref, b_ref, o_ref):
    # x: (B, D_in) f32, wt: (D_in, tn) bf16 (already W^T block), b: (1, tn) f32
    x = x_ref[...].astype(wt_ref.dtype)          # bf16 cast -> native MXU input
    y = jnp.dot(x, wt_ref[...], preferred_element_type=jnp.float32)
    y = y + b_ref[...]
    # tanh-approx GELU, written exactly as the PyTorch module:
    v1 = y * 0.5
    v2 = y + y * (y * y) * 0.044715
    v3 = v2 * 0.7978845608028654
    v4 = jnp.tanh(v3)
    v5 = v4 + 1.0
    o_ref[...] = (v1 * v5).astype(o_ref.dtype)


def _num_tensorcores():
    """TensorCores per chip; conservative default of 1 (correct for v5e/v6e)."""
    try:
        info = pltpu.get_tpu_info()
        for attr in ("tensorcores_per_chip", "num_tensorcores",
                     "cores_per_chip", "num_cores", "core_count"):
            n = getattr(info, attr, None)
            if isinstance(n, int) and n >= 1:
                return n
    except Exception:
        pass
    try:
        kind = jax.devices()[0].device_kind.lower()
        if "v7" in kind:
            return 2
    except Exception:
        pass
    return 1


def make_linear_gelu(w, b, *, n_blocks=None, weight_dtype=jnp.bfloat16):
    """w: (D_out, D_in) f32 (PyTorch Linear layout), b: (D_out,) f32.

    Parameters are prepared ONCE here (transpose + contiguous per-TensorCore
    blocking + bf16 cast); no per-call transpose/cast is ever paid.
    Returns forward(x: (B, D_in) f32) -> (B, D_out) f32.
    """
    D_out, D_in = w.shape
    if n_blocks is None:
        n_blocks = _num_tensorcores()
    if n_blocks < 1 or D_out % n_blocks != 0 or (D_out // n_blocks) % 128 != 0:
        n_blocks = 1
    tn = D_out // n_blocks

    # Column-block i of W^T == rows [i*tn, (i+1)*tn) of w, transposed.
    # Stored (n_blocks, D_in, tn): each block is contiguous in HBM.
    wt_blocks = jnp.transpose(w.reshape(n_blocks, tn, D_in), (0, 2, 1)).astype(weight_dtype)
    b_blocks = b.reshape(n_blocks, 1, tn).astype(jnp.float32)

    # Guarantee true cross-TensorCore sharding of the N split on v7x.
    semantics = (pltpu.CORE_PARALLEL,) if n_blocks > 1 else ("arbitrary",)

    w_itemsize = jnp.dtype(weight_dtype).itemsize

    def forward(x):
        B = x.shape[0]
        x_itemsize = jnp.dtype(x.dtype).itemsize
        cost = pl.CostEstimate(
            flops=2 * B * D_in * D_out,
            transcendentals=B * D_out,
            bytes_accessed=(D_in * D_out * w_itemsize
                            + B * D_in * x_itemsize
                            + B * D_out * x_itemsize
                            + D_out * 4),
        )
        return pl.pallas_call(
            _linear_gelu_kernel,
            out_shape=jax.ShapeDtypeStruct((B, D_out), x.dtype),
            grid=(n_blocks,),
            in_specs=[
                pl.BlockSpec((B, D_in), lambda i: (0, 0)),                     # x: full block
                pl.BlockSpec((pl.Squeezed(), D_in, tn), lambda i: (i, 0, 0)),  # W^T block (contig.)
                pl.BlockSpec((pl.Squeezed(), 1, tn), lambda i: (i, 0, 0)),     # bias block
            ],
            out_specs=pl.BlockSpec((B, tn), lambda i: (0, i)),
            compiler_params=pltpu.CompilerParams(
                dimension_semantics=semantics,
                vmem_limit_bytes=16 * 1024 * 1024,
            ),
            cost_estimate=cost,
        )(x, wt_blocks, b_blocks)

    return forward


def reference(x, w, b, weight_dtype=jnp.bfloat16):
    # Same effective precision as the kernel (bf16 inputs, f32 math).
    x_e = x.astype(weight_dtype).astype(jnp.float32)
    w_e = w.astype(weight_dtype).astype(jnp.float32)
    y = x_e @ w_e.T + b
    v1 = y * 0.5
    v2 = y + y * (y * y) * 0.044715
    v3 = v2 * 0.7978845608028654
    v4 = jnp.tanh(v3)
    return v1 * (v4 + 1.0)


if __name__ == "__main__":
    key = jax.random.PRNGKey(0)
    kx, kw, kb = jax.random.split(key, 3)

    B, D = 1, 512  # module: x2 = randn(1, 512), Linear(512, 512)
    x = jax.random.normal(kx, (B, D), dtype=jnp.float32)
    # Deterministic Linear(512,512) init: uniform(-1/sqrt(D), 1/sqrt(D)).
    bound = 1.0 / (D ** 0.5)
    w = jax.random.uniform(kw, (D, D), minval=-bound, maxval=bound, dtype=jnp.float32)
    b = jax.random.uniform(kb, (D,), minval=-bound, maxval=bound, dtype=jnp.float32)

    fwd = make_linear_gelu(w, b)
    try:
        out = jax.block_until_ready(fwd(x))
    except Exception:
        # Conservative fallback: single grid step, no cross-core semantics.
        fwd = make_linear_gelu(w, b, n_blocks=1)
        out = jax.block_until_ready(fwd(x))

    ref = reference(x, w, b)
    assert out.shape == (B, D)
    assert jnp.allclose(out, ref, atol=5e-3, rtol=5e-3), "mismatch vs reference"
    print("KERNEL_OK")
</pallas_src>

<mosaic_0001>
module attributes {stable_mosaic.version = 11 : i64} {
  func.func @_linear_gelu_kernel(%arg0: i32, %arg1: memref<1x512xf32, #tpu.memory_space<vmem>>, %arg2: memref<1x512x512xbf16, #tpu.memory_space<vmem>>, %arg3: memref<1x1x512xf32, #tpu.memory_space<vmem>>, %arg4: memref<1x512xf32, #tpu.memory_space<vmem>>) attributes {dimension_semantics = [#tpu.dimension_semantics<arbitrary>], iteration_bounds = array<i64: 1>, scalar_prefetch = 0 : i64, scratch_operands = 0 : i64, tpu.core_type = #tpu.core_type<tc>, window_params = [{pipeline_mode = #tpu.pipeline_mode<synchronous>, transform_indices = @transform_0, window_bounds = array<i64: 1, 512>}, {transform_indices = @transform_1, window_bounds = array<i64: 1, 512, 512>}, {transform_indices = @transform_2, window_bounds = array<i64: 1, 1, 512>}, {transform_indices = @transform_3, window_bounds = array<i64: 1, 512>}]} {
    %c0 = arith.constant 0 : index
    %c0_0 = arith.constant 0 : index
    %0 = vector.load %arg1[%c0, %c0_0] : memref<1x512xf32, #tpu.memory_space<vmem>>, vector<1x512xf32>
    %1 = arith.truncf %0 : vector<1x512xf32> to vector<1x512xbf16>
    %c0_1 = arith.constant 0 : index
    %c0_2 = arith.constant 0 : index
    %c0_3 = arith.constant 0 : index
    %2 = vector.load %arg2[%c0_1, %c0_2, %c0_3] : memref<1x512x512xbf16, #tpu.memory_space<vmem>>, vector<1x512x512xbf16>
    %3 = vector.shape_cast %2 : vector<1x512x512xbf16> to vector<512x512xbf16>
    %cst = arith.constant dense<0.000000e+00> : vector<1x512xf32>
    %4 = tpu.matmul %1, %3, %cst {dimension_numbers = #tpu.dot_dimension_numbers<[1], [0], [0], [1], [0, 0, 1, 1], [], []>} : vector<1x512xbf16>, vector<512x512xbf16>, vector<1x512xf32> -> vector<1x512xf32>
    %c0_4 = arith.constant 0 : index
    %c0_5 = arith.constant 0 : index
    %c0_6 = arith.constant 0 : index
    %5 = vector.load %arg3[%c0_4, %c0_5, %c0_6] : memref<1x1x512xf32, #tpu.memory_space<vmem>>, vector<1x1x512xf32>
    %6 = vector.shape_cast %5 : vector<1x1x512xf32> to vector<1x512xf32>
    %7 = arith.addf %4, %6 : vector<1x512xf32>
    %cst_7 = arith.constant 5.000000e-01 : f32
    %8 = vector.broadcast %cst_7 : f32 to vector<1x512xf32>
    %9 = arith.mulf %7, %8 : vector<1x512xf32>
    %10 = arith.mulf %7, %7 : vector<1x512xf32>
    %11 = arith.mulf %7, %10 : vector<1x512xf32>
    %cst_8 = arith.constant 4.471500e-02 : f32
    %12 = vector.broadcast %cst_8 : f32 to vector<1x512xf32>
    %13 = arith.mulf %11, %12 : vector<1x512xf32>
    %14 = arith.addf %7, %13 : vector<1x512xf32>
    %cst_9 = arith.constant 0.797884583 : f32
    %15 = vector.broadcast %cst_9 : f32 to vector<1x512xf32>
    %16 = arith.mulf %14, %15 : vector<1x512xf32>
    %17 = math.tanh %16 : vector<1x512xf32>
    %cst_10 = arith.constant 1.000000e+00 : f32
    %18 = vector.broadcast %cst_10 : f32 to vector<1x512xf32>
    %19 = arith.addf %17, %18 : vector<1x512xf32>
    %20 = arith.mulf %9, %19 : vector<1x512xf32>
    %c0_11 = arith.constant 0 : index
    %c0_12 = arith.constant 0 : index
    %21 = vector.load %arg4[%c0_11, %c0_12] : memref<1x512xf32, #tpu.memory_space<vmem>>, vector<1x512xf32>
    tpu.vector_store %arg4[%c0_11, %c0_12], %20 {strides = array<i32>} : memref<1x512xf32, #tpu.memory_space<vmem>>, vector<1x512xf32>,
    return
  }
  func.func @transform_0(%arg0: i32) -> (i32, i32) {
    %c0_i32 = arith.constant 0 : i32
    %c0_i32_0 = arith.constant 0 : i32
    %c0_i32_1 = arith.constant 0 : i32
    return %c0_i32, %c0_i32_0 : i32, i32
  }
  func.func @transform_1(%arg0: i32) -> (i32, i32, i32) {
    %c0_i32 = arith.constant 0 : i32
    %c0_i32_0 = arith.constant 0 : i32
    %c0_i32_1 = arith.constant 0 : i32
    return %arg0, %c0_i32, %c0_i32_0 : i32, i32, i32
  }
  func.func @transform_2(%arg0: i32) -> (i32, i32, i32) {
    %c0_i32 = arith.constant 0 : i32
    %c0_i32_0 = arith.constant 0 : i32
    %c0_i32_1 = arith.constant 0 : i32
    return %arg0, %c0_i32, %c0_i32_0 : i32, i32, i32
  }
  func.func @transform_3(%arg0: i32) -> (i32, i32) {
    %c0_i32 = arith.constant 0 : i32
    %c0_i32_0 = arith.constant 0 : i32
    return %c0_i32, %arg0 : i32, i32
  }
}

module attributes {stable_mosaic.version = 11 : i64} {
  func.func @_linear_gelu_kernel(%arg0: i32, %arg1: memref<1x512xf32, #tpu.memory_space<vmem>>, %arg2: memref<1x512x512xbf16, #tpu.memory_space<vmem>>, %arg3: memref<1x1x512xf32, #tpu.memory_space<vmem>>, %arg4: memref<1x512xf32, #tpu.memory_space<vmem>>) attributes {dimension_semantics = [#tpu.dimension_semantics<arbitrary>], iteration_bounds = array<i64: 1>, scalar_prefetch = 0 : i64, scratch_operands = 0 : i64, tpu.core_type = #tpu.core_type<tc>, window_params = [{pipeline_mode = #tpu.pipeline_mode<synchronous>, transform_indices = @transform_0, window_bounds = array<i64: 1, 512>}, {transform_indices = @transform_1, window_bounds = array<i64: 1, 512, 512>}, {transform_indices = @transform_2, window_bounds = array<i64: 1, 1, 512>}, {transform_indices = @transform_3, window_bounds = array<i64: 1, 512>}]} {
    %c0 = arith.constant 0 : index
    %c0_0 = arith.constant 0 : index
    %0 = vector.load %arg1[%c0, %c0_0] : memref<1x512xf32, #tpu.memory_space<vmem>>, vector<1x512xf32>
    %1 = arith.truncf %0 : vector<1x512xf32> to vector<1x512xbf16>
    %c0_1 = arith.constant 0 : index
    %c0_2 = arith.constant 0 : index
    %c0_3 = arith.constant 0 : index
    %2 = vector.load %arg2[%c0_1, %c0_2, %c0_3] : memref<1x512x512xbf16, #tpu.memory_space<vmem>>, vector<1x512x512xbf16>
    %3 = vector.shape_cast %2 : vector<1x512x512xbf16> to vector<512x512xbf16>
    %cst = arith.constant dense<0.000000e+00> : vector<1x512xf32>
    %4 = tpu.matmul %1, %3, %cst {dimension_numbers = #tpu.dot_dimension_numbers<[1], [0], [0], [1], [0, 0, 1, 1], [], []>} : vector<1x512xbf16>, vector<512x512xbf16>, vector<1x512xf32> -> vector<1x512xf32>
    %c0_4 = arith.constant 0 : index
    %c0_5 = arith.constant 0 : index
    %c0_6 = arith.constant 0 : index
    %5 = vector.load %arg3[%c0_4, %c0_5, %c0_6] : memref<1x1x512xf32, #tpu.memory_space<vmem>>, vector<1x1x512xf32>
    %6 = vector.shape_cast %5 : vector<1x1x512xf32> to vector<1x512xf32>
    %7 = arith.addf %4, %6 : vector<1x512xf32>
    %cst_7 = arith.constant 5.000000e-01 : f32
    %8 = vector.broadcast %cst_7 : f32 to vector<1x512xf32>
    %9 = arith.mulf %7, %8 : vector<1x512xf32>
    %10 = arith.mulf %7, %7 : vector<1x512xf32>
    %11 = arith.mulf %7, %10 : vector<1x512xf32>
    %cst_8 = arith.constant 4.471500e-02 : f32
    %12 = vector.broadcast %cst_8 : f32 to vector<1x512xf32>
    %13 = arith.mulf %11, %12 : vector<1x512xf32>
    %14 = arith.addf %7, %13 : vector<1x512xf32>
    %cst_9 = arith.constant 0.797884583 : f32
    %15 = vector.broadcast %cst_9 : f32 to vector<1x512xf32>
    %16 = arith.mulf %14, %15 : vector<1x512xf32>
    %17 = math.tanh %16 : vector<1x512xf32>
    %cst_10 = arith.constant 1.000000e+00 : f32
    %18 = vector.broadcast %cst_10 : f32 to vector<1x512xf32>
    %19 = arith.addf %17, %18 : vector<1x512xf32>
    %20 = arith.mulf %9, %19 : vector<1x512xf32>
    %c0_11 = arith.constant 0 : index
    %c0_12 = arith.constant 0 : index
    %21 = vector.load %arg4[%c0_11, %c0_12] : memref<1x512xf32, #tpu.memory_space<vmem>>, vector<1x512xf32>
    tpu.vector_store %arg4[%c0_11, %c0_12], %20 {strides = array<i32>} : memref<1x512xf32, #tpu.memory_space<vmem>>, vector<1x512xf32>,
    return
  }
  func.func @transform_0(%arg0: i32) -> (i32, i32) {
    %c0_i32 = arith.constant 0 : i32
    %c0_i32_0 = arith.constant 0 : i32
    %c0_i32_1 = arith.constant 0 : i32
    return %c0_i32, %c0_i32_0 : i32, i32
  }
  func.func @transform_1(%arg0: i32) -> (i32, i32, i32) {
    %c0_i32 = arith.constant 0 : i32
    %c0_i32_0 = arith.constant 0 : i32
    %c0_i32_1 = arith.constant 0 : i32
    return %arg0, %c0_i32, %c0_i32_0 : i32, i32, i32
  }
  func.func @transform_2(%arg0: i32) -> (i32, i32, i32) {
    %c0_i32 = arith.constant 0 : i32
    %c0_i32_0 = arith.constant 0 : i32
    %c0_i32_1 = arith.constant 0 : i32
    return %arg0, %c0_i32, %c0_i32_0 : i32, i32, i32
  }
  func.func @transform_3(%arg0: i32) -> (i32, i32) {
    %c0_i32 = arith.constant 0 : i32
    %c0_i32_0 = arith.constant 0 : i32
    return %c0_i32, %arg0 : i32, i32
  }
}

</mosaic_0001>

<bundles_post_ra>
// kernel: tpu_custom_call.1
= control target key start
LH: loop header
LB: loop body
LE: loop exit
PB: predicated region body
PF: predicated region fallthrough
CT: control target
= control target key end

     0   :  { %8 = vsyncpa [#allocation3], 0  ;;  %s1611_s0 = inlined_call_operand.hbm [shape: f32[1,512], index: 0, kind: input, shape index: {}]   ;;  %s1612_s1 = inlined_call_operand.hbm [shape: bf16[1,512,512], index: 1, kind: input, shape index: {}]   ;;  %s1613_s2 = inlined_call_operand.hbm [shape: f32[1,1,512], index: 2, kind: input, shape index: {}]   ;;  %s1614_s3 = inlined_call_operand.hbm [shape: f32[1,512], index: 3, kind: output, shape index: {}]  }
   0x1   :  { %9 = vsyncpa [#allocation6], 0 }
   0x2   :  { %10 = vsyncpa [#allocation4], 0  ;;  %s1539_s12 = smov [#allocation5]  }
   0x3   :  { %s26_s13 = sshll.u32 %s1539_s12, 4  ;;  %s27_s13 = int_to_ptr.vmem [resolvable:$true] %s26_s13 }
   0x4   :  { %s1461_s14 = scalar_lea.vmem %s27_s13, 16384  ;;  %p1466_p1 = scmp.lt.s32.totalorder %s27_s13, %s27_s13 }
   0x5   :  { %p1462_p0 = scmp.ne.s32.totalorder %s27_s13, %s1461_s14  ;;  %p1467_p2 = scmp.lt.s32.totalorder %s1461_s14, %s1461_s14 }
   0x7   :  { %p1468_p3 = por %p1467_p2, %p1466_p1 }
   0x9   :  { %p1469_p4 = pnand %p1468_p3, %p1462_p0 }
   0xb   :  { %1472 = shalt.err (!%p1469_p4)
}
   0xc   :  { %s1540_s15 = smov 256   ;;  %s1541_s16 = smov 16  }
   0xd   :  { %32 = dma.hbm_to_vmem [thread:$0]  %s1612_s1, 16384, %s27_s13, [#allocation6], %s1540_s15, %s1540_s15, %s1541_s16  }
   0xe   :  { %s1542_s19 = smov [#allocation2]   ;;  %s1543_s21 = smov [#allocation7]  }
   0xf   :  { %s17_s20 = sshll.u32 %s1542_s19, 4  ;;  %s39_s22 = sshll.u32 %s1543_s21, 4  ;;  %s18_s20 = int_to_ptr.vmem [resolvable:$true] %s17_s20  ;;  %s40_s22 = int_to_ptr.vmem [resolvable:$true] %s39_s22 }
  0x10   :  { %s1481_s23 = scalar_lea.vmem %s18_s20, 64  ;;  %p1486_p6 = scmp.lt.s32.totalorder %s18_s20, %s18_s20 }
  0x11   :  { %p1482_p5 = scmp.ne.s32.totalorder %s18_s20, %s1481_s23  ;;  %p1487_p7 = scmp.lt.s32.totalorder %s1481_s23, %s1481_s23 }
  0x13   :  { %p1488_p8 = por %p1487_p7, %p1486_p6 }
  0x15   :  { %p1489_p9 = pnand %p1488_p8, %p1482_p5 }
  0x17   :  { %1492 = shalt.err (!%p1489_p9)
}
  0x18   :  { %20 = dma.hbm_to_vmem [thread:$0]  %s1611_s0, 64, %s18_s20, [#allocation3]  }
  0x19   :  { %s1501_s26 = scalar_lea.vmem %s40_s22, 64  ;;  %p1506_p11 = scmp.lt.s32.totalorder %s40_s22, %s40_s22 }
  0x1a   :  { %p1502_p10 = scmp.ne.s32.totalorder %s40_s22, %s1501_s26  ;;  %p1507_p12 = scmp.lt.s32.totalorder %s1501_s26, %s1501_s26 }
  0x1c   :  { %p1508_p13 = por %p1507_p12, %p1506_p11 }
  0x1e   :  { %p1509_p0 = pnand %p1508_p13, %p1502_p10 }
  0x20   :  { %1512 = shalt.err (!%p1509_p0)
}
  0x21   :  { %42 = dma.hbm_to_vmem [thread:$0]  %s1613_s2, 64, %s40_s22, [#allocation6]  }
  0x22   :  { %1533 = dma.done.wait [#allocation3], 64  }
  0x23   :  { %1534 = vsyncadd [#allocation3], 4294967232 }
  0x24   :  { %1535 = dma.done.wait [#allocation6], 16448  }
  0x25   :  { %1536 = vsyncadd [#allocation6], 4294950848  ;;  %v1253_v0 = vld [vmem:[#allocation5 + $0xe4] ss:$16 sps:$4 sm:$0xff]   ;;  %v1257_v2 = vld [vmem:[#allocation5 + $0xe0] ss:$16 sps:$4 sm:$0xff]   ;;  %v54_v36 = vlaneseq }
  0x26   :  { %v1255_v1 = vld [vmem:[#allocation5 + $0x2e4] ss:$16 sps:$4 sm:$0xff]   ;;  %868 = vmatprep.subr.bf16.mxu0 %v1253_v0  ;;  %v1258_v3 = vld [vmem:[#allocation5 + $0x2e0] ss:$16 sps:$4 sm:$0xff]   ;;  %v52_v50 = vld [vmem:[#allocation2] sm:$0xf] }
  0x27   :  { %909 = vmatprep.subr.bf16.mxu1 %v1255_v1  ;;  %v1259_v4 = vld [vmem:[#allocation5 + $0xc4] ss:$16 sps:$4 sm:$0xff]   ;;  %869 = vmatpush1.bf16.msra.mxu0 %v1257_v2  ;;  %v1263_v6 = vld [vmem:[#allocation5 + $0xc0] ss:$16 sps:$4 sm:$0xff]   ;;  %v1576_v40 = vshrl.u32 %v54_v36, 7  ;;  %s1545_s0 = smov [#allocation8]  }
  0x28   :  { %910 = vmatpush1.bf16.msra.mxu1 %v1258_v3  ;;  %v1261_v5 = vld [vmem:[#allocation5 + $0x2c4] ss:$16 sps:$4 sm:$0xff]   ;;  %870 = vmatprep.subr.bf16.mxu0 %v1259_v4  ;;  %v1264_v7 = vld [vmem:[#allocation5 + $0x2c0] ss:$16 sps:$4 sm:$0xff]   ;;  %s1108_s2 = sshll.u32 %s1545_s0, 4  ;;  %vm1099_vm0 = vcmp.lt.s32.totalorder %v54_v36, 512  ;;  %s1109_s2 = int_to_ptr.vmem [resolvable:$true] %s1108_s2 }
  0x29   :  { %911 = vmatprep.subr.bf16.mxu1 %v1261_v5  ;;  %v1265_v8 = vld [vmem:[#allocation5 + $0xa4] ss:$16 sps:$4 sm:$0xff]   ;;  %v1269_v10 = vld [vmem:[#allocation5 + $0xa0] ss:$16 sps:$4 sm:$0xff]   ;;  %v60_v46 = vsub.s32 1, %v1576_v40  ;;  %v68_v47 = vsub.s32 3, %v1576_v40  ;;  %p1518_p2 = scmp.lt.s32.totalorder %s1109_s2, %s1109_s2 }
  0x2a   :  { %v1267_v9 = vld [vmem:[#allocation5 + $0x2a4] ss:$16 sps:$4 sm:$0xff]   ;;  %v1270_v11 = vld [vmem:[#allocation5 + $0x2a0] ss:$16 sps:$4 sm:$0xff]   ;;  %v56_v4 = vsub.s32 0, %v1576_v40  ;;  %v64_v5 = vsub.s32 2, %v1576_v40 }
  0x2b   :  { %871 = vmatpush1.bf16.msra.mxu0 %v1263_v6  ;;  %v1271_v12 = vld [vmem:[#allocation5 + $0x84] ss:$16 sps:$4 sm:$0xff]   ;;  %v1275_v14 = vld [vmem:[#allocation5 + $0x80] ss:$16 sps:$4 sm:$0xff]   ;;  %v61_v52 = vrot.slane %v52_v50, %v60_v46  ;;  %v69_v53 = vrot.slane %v52_v50, %v68_v47  ;;  %s1513_s28 = scalar_lea.vmem %s1109_s2, 64 }
  0x2c   :  { %912 = vmatpush1.bf16.msra.mxu1 %v1264_v7  ;;  %872 = vmatprep.subr.bf16.mxu0 %v1265_v8  ;;  %v1273_v13 = vld [vmem:[#allocation5 + $0x284] ss:$16 sps:$4 sm:$0xff]   ;;  %v1276_v15 = vld [vmem:[#allocation5 + $0x280] ss:$16 sps:$4 sm:$0xff]   ;;  %p1514_p1 = scmp.ne.s32.totalorder %s1109_s2, %s1513_s28  ;;  %p1519_p3 = scmp.lt.s32.totalorder %s1513_s28, %s1513_s28 }
  0x2d   :  { %913 = vmatprep.subr.bf16.mxu1 %v1267_v9  ;;  %v1277_v16 = vld [vmem:[#allocation5 + $0x64] ss:$16 sps:$4 sm:$0xff]   ;;  %v1281_v18 = vld [vmem:[#allocation5 + $0x60] ss:$16 sps:$4 sm:$0xff]   ;;  %v75_v57 = vpack.c.bf16 %v61_v52, %v61_v52  ;;  %v77_v58 = vpack.c.bf16 %v69_v53, %v69_v53  ;;  %v1402_v52 = vld [vmem:[#allocation5 + $0x3ec] ss:$16 sps:$4 sm:$0xff]  }
  0x2e   :  { %v1279_v17 = vld [vmem:[#allocation5 + $0x264] ss:$16 sps:$4 sm:$0xff]   ;;  %v1282_v19 = vld [vmem:[#allocation5 + $0x260] ss:$16 sps:$4 sm:$0xff]   ;;  %v1397_v53 = vld [vmem:[#allocation5 + $0x1e8] ss:$16 sps:$4 sm:$0xff]   ;;  %p1520_p4 = por %p1519_p3, %p1518_p2 }
  0x2f   :  { %873 = vmatpush1.bf16.msra.mxu0 %v1269_v10  ;;  %v1283_v20 = vld [vmem:[#allocation5 + $0x44] ss:$16 sps:$4 sm:$0xff]   ;;  %v1287_v22 = vld [vmem:[#allocation5 + $0x40] ss:$16 sps:$4 sm:$0xff]   ;;  %900 = vmatprep.mubr.bf16.mxu0 %v75_v57  ;;  %v57_v10 = vrot.slane %v52_v50, %v56_v4 }
  0x30   :  { %914 = vmatpush1.bf16.msra.mxu1 %v1270_v11  ;;  %874 = vmatprep.subr.bf16.mxu0 %v1271_v12  ;;  %v1285_v21 = vld [vmem:[#allocation5 + $0x244] ss:$16 sps:$4 sm:$0xff]   ;;  %v1288_v23 = vld [vmem:[#allocation5 + $0x240] ss:$16 sps:$4 sm:$0xff]   ;;  %v65_v11 = vrot.slane %v52_v50, %v64_v5  ;;  %v1394_v50 = vld [vmem:[#allocation5 + $0x208] ss:$16 sps:$4 sm:$0xff]   ;;  %p1521_p5 = pnand %p1520_p4, %p1514_p1 }
  0x31   :  { %915 = vmatprep.subr.bf16.mxu1 %v1273_v13  ;;  %v1289_v24 = vld [vmem:[#allocation5 + $0x24] ss:$16 sps:$4 sm:$0xff]   ;;  %v1293_v26 = vld [vmem:[#allocation5 + $0x20] ss:$16 sps:$4 sm:$0xff]   ;;  %941 = vmatprep.mubr.bf16.mxu1 %v77_v58  ;;  %v1351_v13 = vld [vmem:[#allocation5 + $0xec] ss:$16 sps:$4 sm:$0xff]  }
  0x32   :  { %v1291_v25 = vld [vmem:[#allocation5 + $0x224] ss:$16 sps:$4 sm:$0xff]   ;;  %v1294_v27 = vld [vmem:[#allocation5 + $0x220] ss:$16 sps:$4 sm:$0xff]  }
  0x33   :  { %875 = vmatpush1.bf16.msra.mxu0 %v1275_v14  ;;  %v1295_v28 = vld [vmem:[#allocation5 + $0x4] ss:$16 sps:$4 sm:$0xff]   ;;  %v1299_v30 = vld [vmem:[#allocation5] ss:$16 sps:$4 sm:$0xff]   ;;  %v1354_v14 = vld [vmem:[#allocation5 + $0x2ec] ss:$16 sps:$4 sm:$0xff]  }
  0x34   :  { %916 = vmatpush1.bf16.msra.mxu1 %v1276_v15  ;;  %876 = vmatprep.subr.bf16.mxu0 %v1277_v16  ;;  %v1297_v29 = vld [vmem:[#allocation5 + $0x204] ss:$16 sps:$4 sm:$0xff]   ;;  %v1300_v31 = vld [vmem:[#allocation5 + $0x200] ss:$16 sps:$4 sm:$0xff]   ;;  %v1590_v15 = vpack.c.bf16 %v57_v10, %v57_v10  ;;  %v1592_v16 = vpack.c.bf16 %v65_v11, %v65_v11  ;;  %v1432_v10 = vld [vmem:[#allocation5 + $0x34c] ss:$16 sps:$4 sm:$0xff]  }
  0x35   :  { %917 = vmatprep.subr.bf16.mxu1 %v1279_v17  ;;  %v1301_v32 = vld [vmem:[#allocation5 + $0x1e4] ss:$16 sps:$4 sm:$0xff]   ;;  %v1305_v34 = vld [vmem:[#allocation5 + $0x1e0] ss:$16 sps:$4 sm:$0xff]   ;;  %v1349_v17 = vld [vmem:[#allocation5 + $0xe8] ss:$16 sps:$4 sm:$0xff]  }
  0x36   :  { %v1303_v33 = vld [vmem:[#allocation5 + $0x3e4] ss:$16 sps:$4 sm:$0xff]   ;;  %v1306_v35 = vld [vmem:[#allocation5 + $0x3e0] ss:$16 sps:$4 sm:$0xff]   ;;  %v1427_v11 = vld [vmem:[#allocation5 + $0x148] ss:$16 sps:$4 sm:$0xff]  }
  0x37   :  { %877 = vmatpush1.bf16.msra.mxu0 %v1281_v18  ;;  %v1307_v37 = vld [vmem:[#allocation5 + $0x1c4] ss:$16 sps:$4 sm:$0xff]   ;;  %v1311_v39 = vld [vmem:[#allocation5 + $0x1c0] ss:$16 sps:$4 sm:$0xff]   ;;  %v1352_v18 = vld [vmem:[#allocation5 + $0x2e8] ss:$16 sps:$4 sm:$0xff]  }
  0x38   :  { %918 = vmatpush1.bf16.msra.mxu1 %v1282_v19  ;;  %878 = vmatprep.subr.bf16.mxu0 %v1283_v20  ;;  %v1309_v38 = vld [vmem:[#allocation5 + $0x3c4] ss:$16 sps:$4 sm:$0xff]   ;;  %v1312_v41 = vld [vmem:[#allocation5 + $0x3c0] ss:$16 sps:$4 sm:$0xff]   ;;  %v1357_v19 = vld [vmem:[#allocation5 + $0xcc] ss:$16 sps:$4 sm:$0xff]  }
  0x39   :  { %919 = vmatprep.subr.bf16.mxu1 %v1285_v21  ;;  %v1313_v42 = vld [vmem:[#allocation5 + $0x1a4] ss:$16 sps:$4 sm:$0xff]   ;;  %v1317_v44 = vld [vmem:[#allocation5 + $0x1a0] ss:$16 sps:$4 sm:$0xff]   ;;  %v1360_v20 = vld [vmem:[#allocation5 + $0x2cc] ss:$16 sps:$4 sm:$0xff]  }
  0x3a   :  { %v1315_v43 = vld [vmem:[#allocation5 + $0x3a4] ss:$16 sps:$4 sm:$0xff]   ;;  %v1318_v45 = vld [vmem:[#allocation5 + $0x3a0] ss:$16 sps:$4 sm:$0xff]   ;;  %v1355_v21 = vld [vmem:[#allocation5 + $0xc8] ss:$16 sps:$4 sm:$0xff]  }
  0x3b   :  { %879 = vmatpush1.bf16.msra.mxu0 %v1287_v22  ;;  %v1319_v48 = vld [vmem:[#allocation5 + $0x184] ss:$16 sps:$4 sm:$0xff]   ;;  %v1323_v51 = vld [vmem:[#allocation5 + $0x180] ss:$16 sps:$4 sm:$0xff]   ;;  %v1358_v22 = vld [vmem:[#allocation5 + $0x2c8] ss:$16 sps:$4 sm:$0xff]  }
  0x3c   :  { %920 = vmatpush1.bf16.msra.mxu1 %v1288_v23  ;;  %880 = vmatprep.subr.bf16.mxu0 %v1289_v24  ;;  %v1321_v49 = vld [vmem:[#allocation5 + $0x384] ss:$16 sps:$4 sm:$0xff]   ;;  %v1324_v54 = vld [vmem:[#allocation5 + $0x380] ss:$16 sps:$4 sm:$0xff]   ;;  %v1363_v23 = vld [vmem:[#allocation5 + $0xac] ss:$16 sps:$4 sm:$0xff]  }
  0x3d   :  { %921 = vmatprep.subr.bf16.mxu1 %v1291_v25  ;;  %v1325_v55 = vld [vmem:[#allocation5 + $0x164] ss:$16 sps:$4 sm:$0xff]   ;;  %v1329_v59 = vld [vmem:[#allocation5 + $0x160] ss:$16 sps:$4 sm:$0xff]   ;;  %v1366_v24 = vld [vmem:[#allocation5 + $0x2ac] ss:$16 sps:$4 sm:$0xff]  }
  0x3e   :  { %v1327_v56 = vld [vmem:[#allocation5 + $0x364] ss:$16 sps:$4 sm:$0xff]   ;;  %v1330_v60 = vld [vmem:[#allocation5 + $0x360] ss:$16 sps:$4 sm:$0xff]   ;;  %v1361_v25 = vld [vmem:[#allocation5 + $0xa8] ss:$16 sps:$4 sm:$0xff]  }
  0x3f   :  { %881 = vmatpush1.bf16.msra.mxu0 %v1293_v26  ;;  %v1331_v61 = vld [vmem:[#allocation5 + $0x144] ss:$16 sps:$4 sm:$0xff]   ;;  %v1335_v63 = vld [vmem:[#allocation5 + $0x140] ss:$16 sps:$4 sm:$0xff]   ;;  %v1364_v26 = vld [vmem:[#allocation5 + $0x2a8] ss:$16 sps:$4 sm:$0xff]  }
  0x40   :  { %922 = vmatpush1.bf16.msra.mxu1 %v1294_v27  ;;  %882 = vmatprep.subr.bf16.mxu0 %v1295_v28  ;;  %v1333_v62 = vld [vmem:[#allocation5 + $0x344] ss:$16 sps:$4 sm:$0xff]   ;;  %v1336_v0 = vld [vmem:[#allocation5 + $0x340] ss:$16 sps:$4 sm:$0xff]   ;;  %v1369_v27 = vld [vmem:[#allocation5 + $0x8c] ss:$16 sps:$4 sm:$0xff]  }
  0x41   :  { %923 = vmatprep.subr.bf16.mxu1 %v1297_v29  ;;  %v1337_v1 = vld [vmem:[#allocation5 + $0x124] ss:$16 sps:$4 sm:$0xff]   ;;  %v1341_v3 = vld [vmem:[#allocation5 + $0x120] ss:$16 sps:$4 sm:$0xff]   ;;  %v1372_v28 = vld [vmem:[#allocation5 + $0x28c] ss:$16 sps:$4 sm:$0xff]  }
  0x42   :  { %v1339_v2 = vld [vmem:[#allocation5 + $0x324] ss:$16 sps:$4 sm:$0xff]   ;;  %v1342_v6 = vld [vmem:[#allocation5 + $0x320] ss:$16 sps:$4 sm:$0xff]   ;;  %v1367_v29 = vld [vmem:[#allocation5 + $0x88] ss:$16 sps:$4 sm:$0xff]  }
  0x43   :  { %883 = vmatpush1.bf16.msra.mxu0 %v1299_v30  ;;  %v1343_v7 = vld [vmem:[#allocation5 + $0x104] ss:$16 sps:$4 sm:$0xff]   ;;  %v1347_v9 = vld [vmem:[#allocation5 + $0x100] ss:$16 sps:$4 sm:$0xff]   ;;  %v1370_v30 = vld [vmem:[#allocation5 + $0x288] ss:$16 sps:$4 sm:$0xff]  }
  0x44   :  { %924 = vmatpush1.bf16.msra.mxu1 %v1300_v31  ;;  %884 = vmatprep.subr.bf16.mxu0 %v1301_v32  ;;  %v1345_v8 = vld [vmem:[#allocation5 + $0x304] ss:$16 sps:$4 sm:$0xff]   ;;  %v1348_v12 = vld [vmem:[#allocation5 + $0x300] ss:$16 sps:$4 sm:$0xff]   ;;  %v1375_v31 = vld [vmem:[#allocation5 + $0x6c] ss:$16 sps:$4 sm:$0xff]  }
  0x45   :  { %925 = vmatprep.subr.bf16.mxu1 %v1303_v33  ;;  %v1378_v32 = vld [vmem:[#allocation5 + $0x26c] ss:$16 sps:$4 sm:$0xff]   ;;  %v1373_v33 = vld [vmem:[#allocation5 + $0x68] ss:$16 sps:$4 sm:$0xff]  }
  0x47   :  { %885 = vmatpush2.bf16.msra.mxu0 %v1305_v34  ;;  %v1376_v34 = vld [vmem:[#allocation5 + $0x268] ss:$16 sps:$4 sm:$0xff]  }
  0x48   :  { %926 = vmatpush2.bf16.msra.mxu1 %v1306_v35  ;;  %886 = vmatprep.subr.bf16.mxu0 %v1307_v37  ;;  %v1381_v35 = vld [vmem:[#allocation5 + $0x4c] ss:$16 sps:$4 sm:$0xff]  }
  0x49   :  { %927 = vmatprep.subr.bf16.mxu1 %v1309_v38  ;;  %v1384_v37 = vld [vmem:[#allocation5 + $0x24c] ss:$16 sps:$4 sm:$0xff]   ;;  %v1379_v38 = vld [vmem:[#allocation5 + $0x48] ss:$16 sps:$4 sm:$0xff]  }
  0x4b   :  { %887 = vmatpush2.bf16.msra.mxu0 %v1311_v39  ;;  %v1382_v39 = vld [vmem:[#allocation5 + $0x248] ss:$16 sps:$4 sm:$0xff]  }
  0x4c   :  { %928 = vmatpush2.bf16.msra.mxu1 %v1312_v41  ;;  %888 = vmatprep.subr.bf16.mxu0 %v1313_v42  ;;  %v1387_v41 = vld [vmem:[#allocation5 + $0x2c] ss:$16 sps:$4 sm:$0xff]  }
  0x4d   :  { %929 = vmatprep.subr.bf16.mxu1 %v1315_v43  ;;  %v1390_v42 = vld [vmem:[#allocation5 + $0x22c] ss:$16 sps:$4 sm:$0xff]   ;;  %v1385_v43 = vld [vmem:[#allocation5 + $0x28] ss:$16 sps:$4 sm:$0xff]  }
  0x4f   :  { %889 = vmatpush2.bf16.msra.mxu0 %v1317_v44  ;;  %v1388_v44 = vld [vmem:[#allocation5 + $0x228] ss:$16 sps:$4 sm:$0xff]  }
  0x50   :  { %930 = vmatpush2.bf16.msra.mxu1 %v1318_v45  ;;  %890 = vmatprep.subr.bf16.mxu0 %v1319_v48  ;;  %v1393_v45 = vld [vmem:[#allocation5 + $0xc] ss:$16 sps:$4 sm:$0xff]  }
  0x51   :  { %931 = vmatprep.subr.bf16.mxu1 %v1321_v49  ;;  %v1396_v48 = vld [vmem:[#allocation5 + $0x20c] ss:$16 sps:$4 sm:$0xff]   ;;  %v1391_v49 = vld [vmem:[#allocation5 + $0x8] ss:$16 sps:$4 sm:$0xff]  }
  0x53   :  { %891 = vmatpush2.bf16.msra.mxu0 %v1323_v51  ;;  %v1399_v51 = vld [vmem:[#allocation5 + $0x1ec] ss:$16 sps:$4 sm:$0xff]  }
  0x54   :  { %932 = vmatpush2.bf16.msra.mxu1 %v1324_v54  ;;  %892 = vmatprep.subr.bf16.mxu0 %v1325_v55  ;;  %v1400_v54 = vld [vmem:[#allocation5 + $0x3e8] ss:$16 sps:$4 sm:$0xff]   ;;  %v1405_v55 = vld [vmem:[#allocation5 + $0x1cc] ss:$16 sps:$4 sm:$0xff]  }
  0x55   :  { %933 = vmatprep.subr.bf16.mxu1 %v1327_v56  ;;  %v1408_v56 = vld [vmem:[#allocation5 + $0x3cc] ss:$16 sps:$4 sm:$0xff]  }
  0x57   :  { %893 = vmatpush2.bf16.msra.mxu0 %v1329_v59  ;;  %v1411_v59 = vld [vmem:[#allocation5 + $0x1ac] ss:$16 sps:$4 sm:$0xff]  }
  0x58   :  { %934 = vmatpush2.bf16.msra.mxu1 %v1330_v60  ;;  %894 = vmatprep.subr.bf16.mxu0 %v1331_v61  ;;  %v1414_v60 = vld [vmem:[#allocation5 + $0x3ac] ss:$16 sps:$4 sm:$0xff]   ;;  %v1409_v61 = vld [vmem:[#allocation5 + $0x1a8] ss:$16 sps:$4 sm:$0xff]  }
  0x59   :  { %935 = vmatprep.subr.bf16.mxu1 %v1333_v62  ;;  %v1412_v62 = vld [vmem:[#allocation5 + $0x3a8] ss:$16 sps:$4 sm:$0xff]  }
  0x5b   :  { %895 = vmatpush2.bf16.msra.mxu0 %v1335_v63  ;;  %v1417_v63 = vld [vmem:[#allocation5 + $0x18c] ss:$16 sps:$4 sm:$0xff]  }
  0x5c   :  { %936 = vmatpush2.bf16.msra.mxu1 %v1336_v0  ;;  %896 = vmatprep.subr.bf16.mxu0 %v1337_v1  ;;  %v1420_v0 = vld [vmem:[#allocation5 + $0x38c] ss:$16 sps:$4 sm:$0xff]   ;;  %v1415_v1 = vld [vmem:[#allocation5 + $0x188] ss:$16 sps:$4 sm:$0xff]  }
  0x5d   :  { %937 = vmatprep.subr.bf16.mxu1 %v1339_v2  ;;  %v1418_v2 = vld [vmem:[#allocation5 + $0x388] ss:$16 sps:$4 sm:$0xff]  }
  0x5f   :  { %897 = vmatpush2.bf16.msra.mxu0 %v1341_v3  ;;  %v1423_v3 = vld [vmem:[#allocation5 + $0x16c] ss:$16 sps:$4 sm:$0xff]  }
  0x60   :  { %938 = vmatpush2.bf16.msra.mxu1 %v1342_v6  ;;  %898 = vmatprep.subr.bf16.mxu0 %v1343_v7  ;;  %v1426_v6 = vld [vmem:[#allocation5 + $0x36c] ss:$16 sps:$4 sm:$0xff]   ;;  %v1421_v7 = vld [vmem:[#allocation5 + $0x168] ss:$16 sps:$4 sm:$0xff]  }
  0x61   :  { %939 = vmatprep.subr.bf16.mxu1 %v1345_v8  ;;  %v1424_v8 = vld [vmem:[#allocation5 + $0x368] ss:$16 sps:$4 sm:$0xff]  }
  0x63   :  { %899 = vmatpush2.bf16.msra.mxu0 %v1347_v9  ;;  %v1429_v9 = vld [vmem:[#allocation5 + $0x14c] ss:$16 sps:$4 sm:$0xff]  }
  0x64   :  { %940 = vmatpush2.bf16.msra.mxu1 %v1348_v12  ;;  %950 = vmatprep.subr.bf16.mxu0 %v1351_v13  ;;  %v1430_v12 = vld [vmem:[#allocation5 + $0x348] ss:$16 sps:$4 sm:$0xff]   ;;  %v1435_v13 = vld [vmem:[#allocation5 + $0x12c] ss:$16 sps:$4 sm:$0xff]  }
  0x65   :  { %991 = vmatprep.subr.bf16.mxu1 %v1354_v14  ;;  %v1438_v14 = vld [vmem:[#allocation5 + $0x32c] ss:$16 sps:$4 sm:$0xff]  }
  0x66   :  { %901 = vmatmul.mubr.bf16.vlgmr.msra.gmra.mxu0 %v1590_v15 }
  0x67   :  { %942 = vmatmul.mubr.bf16.vlgmr.msra.gmra.mxu1 %v1592_v16  ;;  %951 = vmatpush1.bf16.msra.mxu0 %v1349_v17  ;;  %v1433_v17 = vld [vmem:[#allocation5 + $0x128] ss:$16 sps:$4 sm:$0xff]  }
  0x68   :  { %992 = vmatpush1.bf16.msra.mxu1 %v1352_v18  ;;  %952 = vmatprep.subr.bf16.mxu0 %v1357_v19  ;;  %v1436_v18 = vld [vmem:[#allocation5 + $0x328] ss:$16 sps:$4 sm:$0xff]   ;;  %v1441_v19 = vld [vmem:[#allocation5 + $0x10c] ss:$16 sps:$4 sm:$0xff]  }
  0x69   :  { %993 = vmatprep.subr.bf16.mxu1 %v1360_v20  ;;  %982 = vmatprep.mubr.bf16.mxu0 %v75_v57  ;;  %v1403_v57 = vld [vmem:[#allocation5 + $0x1c8] ss:$16 sps:$4 sm:$0xff]   ;;  %v1444_v20 = vld [vmem:[#allocation5 + $0x30c] ss:$16 sps:$4 sm:$0xff]  }
  0x6a   :  { %1023 = vmatprep.mubr.bf16.mxu1 %v77_v58  ;;  %v1406_v58 = vld [vmem:[#allocation5 + $0x3c8] ss:$16 sps:$4 sm:$0xff]  }
  0x6b   :  { %953 = vmatpush1.bf16.msra.mxu0 %v1355_v21  ;;  %v1439_v21 = vld [vmem:[#allocation5 + $0x108] ss:$16 sps:$4 sm:$0xff]  }
  0x6c   :  { %994 = vmatpush1.bf16.msra.mxu1 %v1358_v22  ;;  %954 = vmatprep.subr.bf16.mxu0 %v1363_v23  ;;  %v1442_v22 = vld [vmem:[#allocation5 + $0x308] ss:$16 sps:$4 sm:$0xff]   ;;  %v206_v23 = vld [vmem:[#allocation7] sm:$0xf] }
  0x6d   :  { %995 = vmatprep.subr.bf16.mxu1 %v1366_v24  ;;  %v851_v24 = vrot.slane %v206_v23, %v56_v4 }
  0x6f   :  { %955 = vmatpush1.bf16.msra.mxu0 %v1361_v25  ;;  %v855_v25 = vrot.slane %v206_v23, %v60_v46 }
  0x70   :  { %996 = vmatpush1.bf16.msra.mxu1 %v1364_v26  ;;  %956 = vmatprep.subr.bf16.mxu0 %v1369_v27 }
  0x71   :  { %997 = vmatprep.subr.bf16.mxu1 %v1372_v28 }
  0x73   :  { %957 = vmatpush1.bf16.msra.mxu0 %v1367_v29 }
  0x74   :  { %998 = vmatpush1.bf16.msra.mxu1 %v1370_v30  ;;  %958 = vmatprep.subr.bf16.mxu0 %v1375_v31 }
  0x75   :  { %999 = vmatprep.subr.bf16.mxu1 %v1378_v32 }
  0x77   :  { %959 = vmatpush1.bf16.msra.mxu0 %v1373_v33 }
  0x78   :  { %1000 = vmatpush1.bf16.msra.mxu1 %v1376_v34  ;;  %960 = vmatprep.subr.bf16.mxu0 %v1381_v35 }
  0x79   :  { %1001 = vmatprep.subr.bf16.mxu1 %v1384_v37 }
  0x7b   :  { %961 = vmatpush1.bf16.msra.mxu0 %v1379_v38 }
  0x7c   :  { %1002 = vmatpush1.bf16.msra.mxu1 %v1382_v39  ;;  %962 = vmatprep.subr.bf16.mxu0 %v1387_v41 }
  0x7d   :  { %1003 = vmatprep.subr.bf16.mxu1 %v1390_v42 }
  0x7f   :  { %963 = vmatpush1.bf16.msra.mxu0 %v1385_v43 }
  0x80   :  { %1004 = vmatpush1.bf16.msra.mxu1 %v1388_v44  ;;  %964 = vmatprep.subr.bf16.mxu0 %v1393_v45 }
  0x81   :  { %1005 = vmatprep.subr.bf16.mxu1 %v1396_v48 }
  0x83   :  { %965 = vmatpush1.bf16.msra.mxu0 %v1391_v49 }
  0x84   :  { %1006 = vmatpush1.bf16.msra.mxu1 %v1394_v50  ;;  %966 = vmatprep.subr.bf16.mxu0 %v1399_v51 }
  0x85   :  { %1007 = vmatprep.subr.bf16.mxu1 %v1402_v52 }
  0x87   :  { %967 = vmatpush2.bf16.msra.mxu0 %v1397_v53 }
  0x88   :  { %1008 = vmatpush2.bf16.msra.mxu1 %v1400_v54  ;;  %968 = vmatprep.subr.bf16.mxu0 %v1405_v55 }
  0x89   :  { %1009 = vmatprep.subr.bf16.mxu1 %v1408_v56 }
  0x8b   :  { %969 = vmatpush2.bf16.msra.mxu0 %v1403_v57  ;;  %v859_v57 = vrot.slane %v206_v23, %v64_v5 }
  0x8c   :  { %1010 = vmatpush2.bf16.msra.mxu1 %v1406_v58  ;;  %970 = vmatprep.subr.bf16.mxu0 %v1411_v59  ;;  %v863_v58 = vrot.slane %v206_v23, %v68_v47 }
  0x8d   :  { %1011 = vmatprep.subr.bf16.mxu1 %v1414_v60 }
  0x8f   :  { %971 = vmatpush2.bf16.msra.mxu0 %v1409_v61 }
  0x90   :  { %1012 = vmatpush2.bf16.msra.mxu1 %v1412_v62  ;;  %972 = vmatprep.subr.bf16.mxu0 %v1417_v63 }
  0x91   :  { %1013 = vmatprep.subr.bf16.mxu1 %v1420_v0 }
  0x93   :  { %973 = vmatpush2.bf16.msra.mxu0 %v1415_v1 }
  0x94   :  { %1014 = vmatpush2.bf16.msra.mxu1 %v1418_v2  ;;  %974 = vmatprep.subr.bf16.mxu0 %v1423_v3 }
  0x95   :  { %1015 = vmatprep.subr.bf16.mxu1 %v1426_v6 }
  0x97   :  { %975 = vmatpush2.bf16.msra.mxu0 %v1421_v7 }
  0x98   :  { %1016 = vmatpush2.bf16.msra.mxu1 %v1424_v8  ;;  %976 = vmatprep.subr.bf16.mxu0 %v1429_v9 }
  0x99   :  { %1017 = vmatprep.subr.bf16.mxu1 %v1432_v10 }
  0x9b   :  { %977 = vmatpush2.bf16.msra.mxu0 %v1427_v11 }
  0x9c   :  { %1018 = vmatpush2.bf16.msra.mxu1 %v1430_v12  ;;  %978 = vmatprep.subr.bf16.mxu0 %v1435_v13 }
  0x9d   :  { %1019 = vmatprep.subr.bf16.mxu1 %v1438_v14 }
  0x9f   :  { %979 = vmatpush2.bf16.msra.mxu0 %v1433_v17 }
  0xa0   :  { %1020 = vmatpush2.bf16.msra.mxu1 %v1436_v18  ;;  %980 = vmatprep.subr.bf16.mxu0 %v1441_v19  ;;  %v1544_v19 = vmov 1966171168  }
  0xa1   :  { %1021 = vmatprep.subr.bf16.mxu1 %v1444_v20  ;;  %v1075_v20 = vunpack.c.l.s4 %v1544_v19 }
  0xa3   :  { %981 = vmatpush2.bf16.msra.mxu0 %v1439_v21  ;;  %v1076_v23 = vunpack.c.0.s8 %v1075_v20 }
  0xa4   :  { %1022 = vmatpush2.bf16.msra.mxu1 %v1442_v22 }
  0xa6   :  { %983 = vmatmul.mubr.bf16.vlgmr.msra.gmra.mxu0 %v1590_v15 }
  0xa7   :  { %1024 = vmatmul.mubr.bf16.vlgmr.msra.gmra.mxu1 %v1592_v16 }
 0x126   :  { %v902_v26 = vpop.f32.mrf.mxu0 }
 0x127   :  { %v943_v27 = vpop.f32.mrf.mxu1  ;;  %v903_v28 = vadd.f32 %v902_v26, %v851_v24 }
 0x128   :  { %v904_v29 = vpop.f32.mrf.mxu0 }
 0x129   :  { %v945_v30 = vpop.f32.mrf.mxu1  ;;  %v944_v31 = vadd.f32 %v943_v27, %v903_v28  ;;  %v905_v32 = vadd.f32 %v904_v29, %v855_v25 }
 0x12a   :  { %v906_v33 = vpop.f32.mrf.mxu0 }
 0x12b   :  { %v947_v34 = vpop.f32.mrf.mxu1  ;;  %v1036_v35 = vmul.f32 %v944_v31, %v944_v31  ;;  %v946_v15 = vadd.f32 %v945_v30, %v905_v32  ;;  %v1032_v51 = vmul.f32 0.5, %v944_v31  ;;  %v1079_v30 = vsub.s32 %v1076_v23, %v1576_v40 }
 0x12c   :  { %v907_v37 = vpop.f32.mrf.mxu0 }
 0x12d   :  { %v948_v16 = vpop.f32.mrf.mxu1  ;;  %v1040_v38 = vmul.f32 %v1036_v35, %v944_v31  ;;  %v1037_v39 = vmul.f32 %v946_v15, %v946_v15  ;;  %v1033_v52 = vmul.f32 0.5, %v946_v15 }
 0x12f   :  { %v1044_v41 = vmul.f32 0.044715, %v1040_v38  ;;  %v1041_v4 = vmul.f32 %v1037_v39, %v946_v15 }
 0x131   :  { %v1048_v42 = vadd.f32 %v1044_v41, %v944_v31  ;;  %v1045_v43 = vmul.f32 0.044715, %v1041_v4 }
 0x133   :  { %v1052_v46 = vmul.f32 0.7978846, %v1048_v42  ;;  %v1049_v44 = vadd.f32 %v1045_v43, %v946_v15 }
 0x135   :  { %1445 = vtanh.f32 %v1052_v46  ;;  %v1053_v45 = vmul.f32 0.7978846, %v1049_v44 }
 0x137   :  { %1447 = vtanh.f32 %v1053_v45 }
 0x142   :  { %v1446_v48 = vpop.eup %1445 }
 0x143   :  { %v1060_v49 = vadd.f32 1.0, %v1446_v48 }
 0x144   :  { %v1448_v50 = vpop.eup %1447 }
 0x145   :  { %v1061_v53 = vadd.f32 1.0, %v1448_v50  ;;  %v1064_v54 = vmul.f32 %v1060_v49, %v1032_v51 }
 0x147   :  { %v1065_v55 = vmul.f32 %v1061_v53, %v1033_v52 }
 0x149   :  { %v1072_v56 = vcombine.low %v1064_v54, %v1065_v55 }
 0x14b   :  { %v1080_v32 = vrot.slane %v1072_v56, %v1079_v30 }
 0x166   :  { %v984_v59 = vpop.f32.mrf.mxu0 }
 0x167   :  { %v1025_v60 = vpop.f32.mrf.mxu1  ;;  %v985_v61 = vadd.f32 %v984_v59, %v859_v57 }
 0x168   :  { %v986_v62 = vpop.f32.mrf.mxu0 }
 0x169   :  { %v1027_v63 = vpop.f32.mrf.mxu1  ;;  %v1026_v0 = vadd.f32 %v1025_v60, %v985_v61  ;;  %v987_v1 = vadd.f32 %v986_v62, %v863_v58 }
 0x16a   :  { %v988_v2 = vpop.f32.mrf.mxu0 }
 0x16b   :  { %v1029_v3 = vpop.f32.mrf.mxu1  ;;  %v1038_v6 = vmul.f32 %v1026_v0, %v1026_v0  ;;  %v1028_v7 = vadd.f32 %v1027_v63, %v987_v1  ;;  %v1034_v25 = vmul.f32 0.5, %v1026_v0 }
 0x16c   :  { %v989_v8 = vpop.f32.mrf.mxu0 }
 0x16d   :  { %v1030_v9 = vpop.f32.mrf.mxu1  ;;  %v1042_v10 = vmul.f32 %v1038_v6, %v1026_v0  ;;  %v1039_v11 = vmul.f32 %v1028_v7, %v1028_v7  ;;  %v1035_v26 = vmul.f32 0.5, %v1028_v7 }
 0x16f   :  { %v1046_v12 = vmul.f32 0.044715, %v1042_v10  ;;  %v1043_v5 = vmul.f32 %v1039_v11, %v1028_v7 }
 0x171   :  { %v1050_v13 = vadd.f32 %v1046_v12, %v1026_v0  ;;  %v1047_v14 = vmul.f32 0.044715, %v1043_v5 }
 0x173   :  { %v1054_v47 = vmul.f32 0.7978846, %v1050_v13  ;;  %v1051_v17 = vadd.f32 %v1047_v14, %v1028_v7 }
 0x175   :  { %1449 = vtanh.f32 %v1054_v47  ;;  %v1055_v18 = vmul.f32 0.7978846, %v1051_v17 }
 0x177   :  { %1451 = vtanh.f32 %v1055_v18 }
 0x182   :  { %v1450_v21 = vpop.eup %1449 }
 0x183   :  { %v1062_v22 = vadd.f32 1.0, %v1450_v21 }
 0x184   :  { %v1452_v24 = vpop.eup %1451 }
 0x185   :  { %v1063_v27 = vadd.f32 1.0, %v1452_v24  ;;  %v1066_v28 = vmul.f32 %v1062_v22, %v1034_v25 }
 0x187   :  { %v1067_v29 = vmul.f32 %v1063_v27, %v1035_v26 }
 0x189   :  { %v1073_v31 = vcombine.low %v1066_v28, %v1067_v29 }
 0x18b   :  { %v1087_v33 = vrot.slane %v1073_v31, %v1079_v30 }
 0x18d   :  { %v1088_v34 = vcombine.low %v1080_v32, %v1087_v33 }
 0x18f   :  { %v1095_v35 = vrot.slane %v1088_v34, %v1079_v30 }
 0x191   :  { %1101 = vst.msk [vmem:[#allocation8] sm:$0xf] %vm1099_vm0, %v1095_v35 }
 0x192   :  { %1524 = shalt.err (!%p1521_p5)
}
 0x193   :  { %1111 = dma.vmem_to_hbm [thread:$0]  %s1109_s2, 64, %s1614_s3, [#allocation4]  }
 0x194   :  { %1537 = dma.done.wait [#allocation4], 64  }
 0x195   :  { %1538 = vsyncadd [#allocation4], 4294967232 }
 0x196   :  { %1115 = vsyncpa [#allocation3], 1 }
 0x197   :  { %1116 = vsyncpa [#allocation6], 1 }
 0x198   :  { %1117 = vsyncpa [#allocation4], 1 }

// kernel: tpu_custom_call.1
= control target key start
LH: loop header
LB: loop body
LE: loop exit
PB: predicated region body
PF: predicated region fallthrough
CT: control target
= control target key end

     0   :  { %8 = vsyncpa [#allocation3], 0  ;;  %s1611_s0 = inlined_call_operand.hbm [shape: f32[1,512], index: 0, kind: input, shape index: {}]   ;;  %s1612_s1 = inlined_call_operand.hbm [shape: bf16[1,512,512], index: 1, kind: input, shape index: {}]   ;;  %s1613_s2 = inlined_call_operand.hbm [shape: f32[1,1,512], index: 2, kind: input, shape index: {}]   ;;  %s1614_s3 = inlined_call_operand.hbm [shape: f32[1,512], index: 3, kind: output, shape index: {}]  }
   0x1   :  { %9 = vsyncpa [#allocation6], 0 }
   0x2   :  { %10 = vsyncpa [#allocation4], 0  ;;  %s1539_s12 = smov [#allocation5]  }
   0x3   :  { %s26_s13 = sshll.u32 %s1539_s12, 4  ;;  %s27_s13 = int_to_ptr.vmem [resolvable:$true] %s26_s13 }
   0x4   :  { %s1461_s14 = scalar_lea.vmem %s27_s13, 16384  ;;  %p1466_p1 = scmp.lt.s32.totalorder %s27_s13, %s27_s13 }
   0x5   :  { %p1462_p0 = scmp.ne.s32.totalorder %s27_s13, %s1461_s14  ;;  %p1467_p2 = scmp.lt.s32.totalorder %s1461_s14, %s1461_s14 }
   0x7   :  { %p1468_p3 = por %p1467_p2, %p1466_p1 }
   0x9   :  { %p1469_p4 = pnand %p1468_p3, %p1462_p0 }
   0xb   :  { %1472 = shalt.err (!%p1469_p4)
}
   0xc   :  { %s1540_s15 = smov 256   ;;  %s1541_s16 = smov 16  }
   0xd   :  { %32 = dma.hbm_to_vmem [thread:$0]  %s1612_s1, 16384, %s27_s13, [#allocation6], %s1540_s15, %s1540_s15, %s1541_s16  }
   0xe   :  { %s1542_s19 = smov [#allocation2]   ;;  %s1543_s21 = smov [#allocation7]  }
   0xf   :  { %s17_s20 = sshll.u32 %s1542_s19, 4  ;;  %s39_s22 = sshll.u32 %s1543_s21, 4  ;;  %s18_s20 = int_to_ptr.vmem [resolvable:$true] %s17_s20  ;;  %s40_s22 = int_to_ptr.vmem [resolvable:$true] %s39_s22 }
  0x10   :  { %s1481_s23 = scalar_lea.vmem %s18_s20, 64  ;;  %p1486_p6 = scmp.lt.s32.totalorder %s18_s20, %s18_s20 }
  0x11   :  { %p1482_p5 = scmp.ne.s32.totalorder %s18_s20, %s1481_s23  ;;  %p1487_p7 = scmp.lt.s32.totalorder %s1481_s23, %s1481_s23 }
  0x13   :  { %p1488_p8 = por %p1487_p7, %p1486_p6 }
  0x15   :  { %p1489_p9 = pnand %p1488_p8, %p1482_p5 }
  0x17   :  { %1492 = shalt.err (!%p1489_p9)
}
  0x18   :  { %20 = dma.hbm_to_vmem [thread:$0]  %s1611_s0, 64, %s18_s20, [#allocation3]  }
  0x19   :  { %s1501_s26 = scalar_lea.vmem %s40_s22, 64  ;;  %p1506_p11 = scmp.lt.s32.totalorder %s40_s22, %s40_s22 }
  0x1a   :  { %p1502_p10 = scmp.ne.s32.totalorder %s40_s22, %s1501_s26  ;;  %p1507_p12 = scmp.lt.s32.totalorder %s1501_s26, %s1501_s26 }
  0x1c   :  { %p1508_p13 = por %p1507_p12, %p1506_p11 }
  0x1e   :  { %p1509_p0 = pnand %p1508_p13, %p1502_p10 }
  0x20   :  { %1512 = shalt.err (!%p1509_p0)
}
  0x21   :  { %42 = dma.hbm_to_vmem [thread:$0]  %s1613_s2, 64, %s40_s22, [#allocation6]  }
  0x22   :  { %1533 = dma.done.wait [#allocation3], 64  }
  0x23   :  { %1534 = vsyncadd [#allocation3], 4294967232 }
  0x24   :  { %1535 = dma.done.wait [#allocation6], 16448  }
  0x25   :  { %1536 = vsyncadd [#allocation6], 4294950848  ;;  %v1253_v0 = vld [vmem:[#allocation5 + $0xe4] ss:$16 sps:$4 sm:$0xff]   ;;  %v1257_v2 = vld [vmem:[#allocation5 + $0xe0] ss:$16 sps:$4 sm:$0xff]   ;;  %v54_v36 = vlaneseq }
  0x26   :  { %v1255_v1 = vld [vmem:[#allocation5 + $0x2e4] ss:$16 sps:$4 sm:$0xff]   ;;  %868 = vmatprep.subr.bf16.mxu0 %v1253_v0  ;;  %v1258_v3 = vld [vmem:[#allocation5 + $0x2e0] ss:$16 sps:$4 sm:$0xff]   ;;  %v52_v50 = vld [vmem:[#allocation2] sm:$0xf] }
  0x27   :  { %909 = vmatprep.subr.bf16.mxu1 %v1255_v1  ;;  %v1259_v4 = vld [vmem:[#allocation5 + $0xc4] ss:$16 sps:$4 sm:$0xff]   ;;  %869 = vmatpush1.bf16.msra.mxu0 %v1257_v2  ;;  %v1263_v6 = vld [vmem:[#allocation5 + $0xc0] ss:$16 sps:$4 sm:$0xff]   ;;  %v1576_v40 = vshrl.u32 %v54_v36, 7  ;;  %s1545_s0 = smov [#allocation8]  }
  0x28   :  { %910 = vmatpush1.bf16.msra.mxu1 %v1258_v3  ;;  %v1261_v5 = vld [vmem:[#allocation5 + $0x2c4] ss:$16 sps:$4 sm:$0xff]   ;;  %870 = vmatprep.subr.bf16.mxu0 %v1259_v4  ;;  %v1264_v7 = vld [vmem:[#allocation5 + $0x2c0] ss:$16 sps:$4 sm:$0xff]   ;;  %s1108_s2 = sshll.u32 %s1545_s0, 4  ;;  %vm1099_vm0 = vcmp.lt.s32.totalorder %v54_v36, 512  ;;  %s1109_s2 = int_to_ptr.vmem [resolvable:$true] %s1108_s2 }
  0x29   :  { %911 = vmatprep.subr.bf16.mxu1 %v1261_v5  ;;  %v1265_v8 = vld [vmem:[#allocation5 + $0xa4] ss:$16 sps:$4 sm:$0xff]   ;;  %v1269_v10 = vld [vmem:[#allocation5 + $0xa0] ss:$16 sps:$4 sm:$0xff]   ;;  %v60_v46 = vsub.s32 1, %v1576_v40  ;;  %v68_v47 = vsub.s32 3, %v1576_v40  ;;  %p1518_p2 = scmp.lt.s32.totalorder %s1109_s2, %s1109_s2 }
  0x2a   :  { %v1267_v9 = vld [vmem:[#allocation5 + $0x2a4] ss:$16 sps:$4 sm:$0xff]   ;;  %v1270_v11 = vld [vmem:[#allocation5 + $0x2a0] ss:$16 sps:$4 sm:$0xff]   ;;  %v56_v4 = vsub.s32 0, %v1576_v40  ;;  %v64_v5 = vsub.s32 2, %v1576_v40 }
  0x2b   :  { %871 = vmatpush1.bf16.msra.mxu0 %v1263_v6  ;;  %v1271_v12 = vld [vmem:[#allocation5 + $0x84] ss:$16 sps:$4 sm:$0xff]   ;;  %v1275_v14 = vld [vmem:[#allocation5 + $0x80] ss:$16 sps:$4 sm:$0xff]   ;;  %v61_v52 = vrot.slane %v52_v50, %v60_v46  ;;  %v69_v53 = vrot.slane %v52_v50, %v68_v47  ;;  %s1513_s28 = scalar_lea.vmem %s1109_s2, 64 }
  0x2c   :  { %912 = vmatpush1.bf16.msra.mxu1 %v1264_v7  ;;  %872 = vmatprep.subr.bf16.mxu0 %v1265_v8  ;;  %v1273_v13 = vld [vmem:[#allocation5 + $0x284] ss:$16 sps:$4 sm:$0xff]   ;;  %v1276_v15 = vld [vmem:[#allocation5 + $0x280] ss:$16 sps:$4 sm:$0xff]   ;;  %p1514_p1 = scmp.ne.s32.totalorder %s1109_s2, %s1513_s28  ;;  %p1519_p3 = scmp.lt.s32.totalorder %s1513_s28, %s1513_s28 }
  0x2d   :  { %913 = vmatprep.subr.bf16.mxu1 %v1267_v9  ;;  %v1277_v16 = vld [vmem:[#allocation5 + $0x64] ss:$16 sps:$4 sm:$0xff]   ;;  %v1281_v18 = vld [vmem:[#allocation5 + $0x60] ss:$16 sps:$4 sm:$0xff]   ;;  %v75_v57 = vpack.c.bf16 %v61_v52, %v61_v52  ;;  %v77_v58 = vpack.c.bf16 %v69_v53, %v69_v53  ;;  %v1402_v52 = vld [vmem:[#allocation5 + $0x3ec] ss:$16 sps:$4 sm:$0xff]  }
  0x2e   :  { %v1279_v17 = vld [vmem:[#allocation5 + $0x264] ss:$16 sps:$4 sm:$0xff]   ;;  %v1282_v19 = vld [vmem:[#allocation5 + $0x260] ss:$16 sps:$4 sm:$0xff]   ;;  %v1397_v53 = vld [vmem:[#allocation5 + $0x1e8] ss:$16 sps:$4 sm:$0xff]   ;;  %p1520_p4 = por %p1519_p3, %p1518_p2 }
  0x2f   :  { %873 = vmatpush1.bf16.msra.mxu0 %v1269_v10  ;;  %v1283_v20 = vld [vmem:[#allocation5 + $0x44] ss:$16 sps:$4 sm:$0xff]   ;;  %v1287_v22 = vld [vmem:[#allocation5 + $0x40] ss:$16 sps:$4 sm:$0xff]   ;;  %900 = vmatprep.mubr.bf16.mxu0 %v75_v57  ;;  %v57_v10 = vrot.slane %v52_v50, %v56_v4 }
  0x30   :  { %914 = vmatpush1.bf16.msra.mxu1 %v1270_v11  ;;  %874 = vmatprep.subr.bf16.mxu0 %v1271_v12  ;;  %v1285_v21 = vld [vmem:[#allocation5 + $0x244] ss:$16 sps:$4 sm:$0xff]   ;;  %v1288_v23 = vld [vmem:[#allocation5 + $0x240] ss:$16 sps:$4 sm:$0xff]   ;;  %v65_v11 = vrot.slane %v52_v50, %v64_v5  ;;  %v1394_v50 = vld [vmem:[#allocation5 + $0x208] ss:$16 sps:$4 sm:$0xff]   ;;  %p1521_p5 = pnand %p1520_p4, %p1514_p1 }
  0x31   :  { %915 = vmatprep.subr.bf16.mxu1 %v1273_v13  ;;  %v1289_v24 = vld [vmem:[#allocation5 + $0x24] ss:$16 sps:$4 sm:$0xff]   ;;  %v1293_v26 = vld [vmem:[#allocation5 + $0x20] ss:$16 sps:$4 sm:$0xff]   ;;  %941 = vmatprep.mubr.bf16.mxu1 %v77_v58  ;;  %v1351_v13 = vld [vmem:[#allocation5 + $0xec] ss:$16 sps:$4 sm:$0xff]  }
  0x32   :  { %v1291_v25 = vld [vmem:[#allocation5 + $0x224] ss:$16 sps:$4 sm:$0xff]   ;;  %v1294_v27 = vld [vmem:[#allocation5 + $0x220] ss:$16 sps:$4 sm:$0xff]  }
  0x33   :  { %875 = vmatpush1.bf16.msra.mxu0 %v1275_v14  ;;  %v1295_v28 = vld [vmem:[#allocation5 + $0x4] ss:$16 sps:$4 sm:$0xff]   ;;  %v1299_v30 = vld [vmem:[#allocation5] ss:$16 sps:$4 sm:$0xff]   ;;  %v1354_v14 = vld [vmem:[#allocation5 + $0x2ec] ss:$16 sps:$4 sm:$0xff]  }
  0x34   :  { %916 = vmatpush1.bf16.msra.mxu1 %v1276_v15  ;;  %876 = vmatprep.subr.bf16.mxu0 %v1277_v16  ;;  %v1297_v29 = vld [vmem:[#allocation5 + $0x204] ss:$16 sps:$4 sm:$0xff]   ;;  %v1300_v31 = vld [vmem:[#allocation5 + $0x200] ss:$16 sps:$4 sm:$0xff]   ;;  %v1590_v15 = vpack.c.bf16 %v57_v10, %v57_v10  ;;  %v1592_v16 = vpack.c.bf16 %v65_v11, %v65_v11  ;;  %v1432_v10 = vld [vmem:[#allocation5 + $0x34c] ss:$16 sps:$4 sm:$0xff]  }
  0x35   :  { %917 = vmatprep.subr.bf16.mxu1 %v1279_v17  ;;  %v1301_v32 = vld [vmem:[#allocation5 + $0x1e4] ss:$16 sps:$4 sm:$0xff]   ;;  %v1305_v34 = vld [vmem:[#allocation5 + $0x1e0] ss:$16 sps:$4 sm:$0xff]   ;;  %v1349_v17 = vld [vmem:[#allocation5 + $0xe8] ss:$16 sps:$4 sm:$0xff]  }
  0x36   :  { %v1303_v33 = vld [vmem:[#allocation5 + $0x3e4] ss:$16 sps:$4 sm:$0xff]   ;;  %v1306_v35 = vld [vmem:[#allocation5 + $0x3e0] ss:$16 sps:$4 sm:$0xff]   ;;  %v1427_v11 = vld [vmem:[#allocation5 + $0x148] ss:$16 sps:$4 sm:$0xff]  }
  0x37   :  { %877 = vmatpush1.bf16.msra.mxu0 %v1281_v18  ;;  %v1307_v37 = vld [vmem:[#allocation5 + $0x1c4] ss:$16 sps:$4 sm:$0xff]   ;;  %v1311_v39 = vld [vmem:[#allocation5 + $0x1c0] ss:$16 sps:$4 sm:$0xff]   ;;  %v1352_v18 = vld [vmem:[#allocation5 + $0x2e8] ss:$16 sps:$4 sm:$0xff]  }
  0x38   :  { %918 = vmatpush1.bf16.msra.mxu1 %v1282_v19  ;;  %878 = vmatprep.subr.bf16.mxu0 %v1283_v20  ;;  %v1309_v38 = vld [vmem:[#allocation5 + $0x3c4] ss:$16 sps:$4 sm:$0xff]   ;;  %v1312_v41 = vld [vmem:[#allocation5 + $0x3c0] ss:$16 sps:$4 sm:$0xff]   ;;  %v1357_v19 = vld [vmem:[#allocation5 + $0xcc] ss:$16 sps:$4 sm:$0xff]  }
  0x39   :  { %919 = vmatprep.subr.bf16.mxu1 %v1285_v21  ;;  %v1313_v42 = vld [vmem:[#allocation5 + $0x1a4] ss:$16 sps:$4 sm:$0xff]   ;;  %v1317_v44 = vld [vmem:[#allocation5 + $0x1a0] ss:$16 sps:$4 sm:$0xff]   ;;  %v1360_v20 = vld [vmem:[#allocation5 + $0x2cc] ss:$16 sps:$4 sm:$0xff]  }
  0x3a   :  { %v1315_v43 = vld [vmem:[#allocation5 + $0x3a4] ss:$16 sps:$4 sm:$0xff]   ;;  %v1318_v45 = vld [vmem:[#allocation5 + $0x3a0] ss:$16 sps:$4 sm:$0xff]   ;;  %v1355_v21 = vld [vmem:[#allocation5 + $0xc8] ss:$16 sps:$4 sm:$0xff]  }
  0x3b   :  { %879 = vmatpush1.bf16.msra.mxu0 %v1287_v22  ;;  %v1319_v48 = vld [vmem:[#allocation5 + $0x184] ss:$16 sps:$4 sm:$0xff]   ;;  %v1323_v51 = vld [vmem:[#allocation5 + $0x180] ss:$16 sps:$4 sm:$0xff]   ;;  %v1358_v22 = vld [vmem:[#allocation5 + $0x2c8] ss:$16 sps:$4 sm:$0xff]  }
  0x3c   :  { %920 = vmatpush1.bf16.msra.mxu1 %v1288_v23  ;;  %880 = vmatprep.subr.bf16.mxu0 %v1289_v24  ;;  %v1321_v49 = vld [vmem:[#allocation5 + $0x384] ss:$16 sps:$4 sm:$0xff]   ;;  %v1324_v54 = vld [vmem:[#allocation5 + $0x380] ss:$16 sps:$4 sm:$0xff]   ;;  %v1363_v23 = vld [vmem:[#allocation5 + $0xac] ss:$16 sps:$4 sm:$0xff]  }
  0x3d   :  { %921 = vmatprep.subr.bf16.mxu1 %v1291_v25  ;;  %v1325_v55 = vld [vmem:[#allocation5 + $0x164] ss:$16 sps:$4 sm:$0xff]   ;;  %v1329_v59 = vld [vmem:[#allocation5 + $0x160] ss:$16 sps:$4 sm:$0xff]   ;;  %v1366_v24 = vld [vmem:[#allocation5 + $0x2ac] ss:$16 sps:$4 sm:$0xff]  }
  0x3e   :  { %v1327_v56 = vld [vmem:[#allocation5 + $0x364] ss:$16 sps:$4 sm:$0xff]   ;;  %v1330_v60 = vld [vmem:[#allocation5 + $0x360] ss:$16 sps:$4 sm:$0xff]   ;;  %v1361_v25 = vld [vmem:[#allocation5 + $0xa8] ss:$16 sps:$4 sm:$0xff]  }
  0x3f   :  { %881 = vmatpush1.bf16.msra.mxu0 %v1293_v26  ;;  %v1331_v61 = vld [vmem:[#allocation5 + $0x144] ss:$16 sps:$4 sm:$0xff]   ;;  %v1335_v63 = vld [vmem:[#allocation5 + $0x140] ss:$16 sps:$4 sm:$0xff]   ;;  %v1364_v26 = vld [vmem:[#allocation5 + $0x2a8] ss:$16 sps:$4 sm:$0xff]  }
  0x40   :  { %922 = vmatpush1.bf16.msra.mxu1 %v1294_v27  ;;  %882 = vmatprep.subr.bf16.mxu0 %v1295_v28  ;;  %v1333_v62 = vld [vmem:[#allocation5 + $0x344] ss:$16 sps:$4 sm:$0xff]   ;;  %v1336_v0 = vld [vmem:[#allocation5 + $0x340] ss:$16 sps:$4 sm:$0xff]   ;;  %v1369_v27 = vld [vmem:[#allocation5 + $0x8c] ss:$16 sps:$4 sm:$0xff]  }
  0x41   :  { %923 = vmatprep.subr.bf16.mxu1 %v1297_v29  ;;  %v1337_v1 = vld [vmem:[#allocation5 + $0x124] ss:$16 sps:$4 sm:$0xff]   ;;  %v1341_v3 = vld [vmem:[#allocation5 + $0x120] ss:$16 sps:$4 sm:$0xff]   ;;  %v1372_v28 = vld [vmem:[#allocation5 + $0x28c] ss:$16 sps:$4 sm:$0xff]  }
  0x42   :  { %v1339_v2 = vld [vmem:[#allocation5 + $0x324] ss:$16 sps:$4 sm:$0xff]   ;;  %v1342_v6 = vld [vmem:[#allocation5 + $0x320] ss:$16 sps:$4 sm:$0xff]   ;;  %v1367_v29 = vld [vmem:[#allocation5 + $0x88] ss:$16 sps:$4 sm:$0xff]  }
  0x43   :  { %883 = vmatpush1.bf16.msra.mxu0 %v1299_v30  ;;  %v1343_v7 = vld [vmem:[#allocation5 + $0x104] ss:$16 sps:$4 sm:$0xff]   ;;  %v1347_v9 = vld [vmem:[#allocation5 + $0x100] ss:$16 sps:$4 sm:$0xff]   ;;  %v1370_v30 = vld [vmem:[#allocation5 + $0x288] ss:$16 sps:$4 sm:$0xff]  }
  0x44   :  { %924 = vmatpush1.bf16.msra.mxu1 %v1300_v31  ;;  %884 = vmatprep.subr.bf16.mxu0 %v1301_v32  ;;  %v1345_v8 = vld [vmem:[#allocation5 + $0x304] ss:$16 sps:$4 sm:$0xff]   ;;  %v1348_v12 = vld [vmem:[#allocation5 + $0x300] ss:$16 sps:$4 sm:$0xff]   ;;  %v1375_v31 = vld [vmem:[#allocation5 + $0x6c] ss:$16 sps:$4 sm:$0xff]  }
  0x45   :  { %925 = vmatprep.subr.bf16.mxu1 %v1303_v33  ;;  %v1378_v32 = vld [vmem:[#allocation5 + $0x26c] ss:$16 sps:$4 sm:$0xff]   ;;  %v1373_v33 = vld [vmem:[#allocation5 + $0x68] ss:$16 sps:$4 sm:$0xff]  }
  0x47   :  { %885 = vmatpush2.bf16.msra.mxu0 %v1305_v34  ;;  %v1376_v34 = vld [vmem:[#allocation5 + $0x268] ss:$16 sps:$4 sm:$0xff]  }
  0x48   :  { %926 = vmatpush2.bf16.msra.mxu1 %v1306_v35  ;;  %886 = vmatprep.subr.bf16.mxu0 %v1307_v37  ;;  %v1381_v35 = vld [vmem:[#allocation5 + $0x4c] ss:$16 sps:$4 sm:$0xff]  }
  0x49   :  { %927 = vmatprep.subr.bf16.mxu1 %v1309_v38  ;;  %v1384_v37 = vld [vmem:[#allocation5 + $0x24c] ss:$16 sps:$4 sm:$0xff]   ;;  %v1379_v38 = vld [vmem:[#allocation5 + $0x48] ss:$16 sps:$4 sm:$0xff]  }
  0x4b   :  { %887 = vmatpush2.bf16.msra.mxu0 %v1311_v39  ;;  %v1382_v39 = vld [vmem:[#allocation5 + $0x248] ss:$16 sps:$4 sm:$0xff]  }
  0x4c   :  { %928 = vmatpush2.bf16.msra.mxu1 %v1312_v41  ;;  %888 = vmatprep.subr.bf16.mxu0 %v1313_v42  ;;  %v1387_v41 = vld [vmem:[#allocation5 + $0x2c] ss:$16 sps:$4 sm:$0xff]  }
  0x4d   :  { %929 = vmatprep.subr.bf16.mxu1 %v1315_v43  ;;  %v1390_v42 = vld [vmem:[#allocation5 + $0x22c] ss:$16 sps:$4 sm:$0xff]   ;;  %v1385_v43 = vld [vmem:[#allocation5 + $0x28] ss:$16 sps:$4 sm:$0xff]  }
  0x4f   :  { %889 = vmatpush2.bf16.msra.mxu0 %v1317_v44  ;;  %v1388_v44 = vld [vmem:[#allocation5 + $0x228] ss:$16 sps:$4 sm:$0xff]  }
  0x50   :  { %930 = vmatpush2.bf16.msra.mxu1 %v1318_v45  ;;  %890 = vmatprep.subr.bf16.mxu0 %v1319_v48  ;;  %v1393_v45 = vld [vmem:[#allocation5 + $0xc] ss:$16 sps:$4 sm:$0xff]  }
  0x51   :  { %931 = vmatprep.subr.bf16.mxu1 %v1321_v49  ;;  %v1396_v48 = vld [vmem:[#allocation5 + $0x20c] ss:$16 sps:$4 sm:$0xff]   ;;  %v1391_v49 = vld [vmem:[#allocation5 + $0x8] ss:$16 sps:$4 sm:$0xff]  }
  0x53   :  { %891 = vmatpush2.bf16.msra.mxu0 %v1323_v51  ;;  %v1399_v51 = vld [vmem:[#allocation5 + $0x1ec] ss:$16 sps:$4 sm:$0xff]  }
  0x54   :  { %932 = vmatpush2.bf16.msra.mxu1 %v1324_v54  ;;  %892 = vmatprep.subr.bf16.mxu0 %v1325_v55  ;;  %v1400_v54 = vld [vmem:[#allocation5 + $0x3e8] ss:$16 sps:$4 sm:$0xff]   ;;  %v1405_v55 = vld [vmem:[#allocation5 + $0x1cc] ss:$16 sps:$4 sm:$0xff]  }
  0x55   :  { %933 = vmatprep.subr.bf16.mxu1 %v1327_v56  ;;  %v1408_v56 = vld [vmem:[#allocation5 + $0x3cc] ss:$16 sps:$4 sm:$0xff]  }
  0x57   :  { %893 = vmatpush2.bf16.msra.mxu0 %v1329_v59  ;;  %v1411_v59 = vld [vmem:[#allocation5 + $0x1ac] ss:$16 sps:$4 sm:$0xff]  }
  0x58   :  { %934 = vmatpush2.bf16.msra.mxu1 %v1330_v60  ;;  %894 = vmatprep.subr.bf16.mxu0 %v1331_v61  ;;  %v1414_v60 = vld [vmem:[#allocation5 + $0x3ac] ss:$16 sps:$4 sm:$0xff]   ;;  %v1409_v61 = vld [vmem:[#allocation5 + $0x1a8] ss:$16 sps:$4 sm:$0xff]  }
  0x59   :  { %935 = vmatprep.subr.bf16.mxu1 %v1333_v62  ;;  %v1412_v62 = vld [vmem:[#allocation5 + $0x3a8] ss:$16 sps:$4 sm:$0xff]  }
  0x5b   :  { %895 = vmatpush2.bf16.msra.mxu0 %v1335_v63  ;;  %v1417_v63 = vld [vmem:[#allocation5 + $0x18c] ss:$16 sps:$4 sm:$0xff]  }
  0x5c   :  { %936 = vmatpush2.bf16.msra.mxu1 %v1336_v0  ;;  %896 = vmatprep.subr.bf16.mxu0 %v1337_v1  ;;  %v1420_v0 = vld [vmem:[#allocation5 + $0x38c] ss:$16 sps:$4 sm:$0xff]   ;;  %v1415_v1 = vld [vmem:[#allocation5 + $0x188] ss:$16 sps:$4 sm:$0xff]  }
  0x5d   :  { %937 = vmatprep.subr.bf16.mxu1 %v1339_v2  ;;  %v1418_v2 = vld [vmem:[#allocation5 + $0x388] ss:$16 sps:$4 sm:$0xff]  }
  0x5f   :  { %897 = vmatpush2.bf16.msra.mxu0 %v1341_v3  ;;  %v1423_v3 = vld [vmem:[#allocation5 + $0x16c] ss:$16 sps:$4 sm:$0xff]  }
  0x60   :  { %938 = vmatpush2.bf16.msra.mxu1 %v1342_v6  ;;  %898 = vmatprep.subr.bf16.mxu0 %v1343_v7  ;;  %v1426_v6 = vld [vmem:[#allocation5 + $0x36c] ss:$16 sps:$4 sm:$0xff]   ;;  %v1421_v7 = vld [vmem:[#allocation5 + $0x168] ss:$16 sps:$4 sm:$0xff]  }
  0x61   :  { %939 = vmatprep.subr.bf16.mxu1 %v1345_v8  ;;  %v1424_v8 = vld [vmem:[#allocation5 + $0x368] ss:$16 sps:$4 sm:$0xff]  }
  0x63   :  { %899 = vmatpush2.bf16.msra.mxu0 %v1347_v9  ;;  %v1429_v9 = vld [vmem:[#allocation5 + $0x14c] ss:$16 sps:$4 sm:$0xff]  }
  0x64   :  { %940 = vmatpush2.bf16.msra.mxu1 %v1348_v12  ;;  %950 = vmatprep.subr.bf16.mxu0 %v1351_v13  ;;  %v1430_v12 = vld [vmem:[#allocation5 + $0x348] ss:$16 sps:$4 sm:$0xff]   ;;  %v1435_v13 = vld [vmem:[#allocation5 + $0x12c] ss:$16 sps:$4 sm:$0xff]  }
  0x65   :  { %991 = vmatprep.subr.bf16.mxu1 %v1354_v14  ;;  %v1438_v14 = vld [vmem:[#allocation5 + $0x32c] ss:$16 sps:$4 sm:$0xff]  }
  0x66   :  { %901 = vmatmul.mubr.bf16.vlgmr.msra.gmra.mxu0 %v1590_v15 }
  0x67   :  { %942 = vmatmul.mubr.bf16.vlgmr.msra.gmra.mxu1 %v1592_v16  ;;  %951 = vmatpush1.bf16.msra.mxu0 %v1349_v17  ;;  %v1433_v17 = vld [vmem:[#allocation5 + $0x128] ss:$16 sps:$4 sm:$0xff]  }
  0x68   :  { %992 = vmatpush1.bf16.msra.mxu1 %v1352_v18  ;;  %952 = vmatprep.subr.bf16.mxu0 %v1357_v19  ;;  %v1436_v18 = vld [vmem:[#allocation5 + $0x328] ss:$16 sps:$4 sm:$0xff]   ;;  %v1441_v19 = vld [vmem:[#allocation5 + $0x10c] ss:$16 sps:$4 sm:$0xff]  }
  0x69   :  { %993 = vmatprep.subr.bf16.mxu1 %v1360_v20  ;;  %982 = vmatprep.mubr.bf16.mxu0 %v75_v57  ;;  %v1403_v57 = vld [vmem:[#allocation5 + $0x1c8] ss:$16 sps:$4 sm:$0xff]   ;;  %v1444_v20 = vld [vmem:[#allocation5 + $0x30c] ss:$16 sps:$4 sm:$0xff]  }
  0x6a   :  { %1023 = vmatprep.mubr.bf16.mxu1 %v77_v58  ;;  %v1406_v58 = vld [vmem:[#allocation5 + $0x3c8] ss:$16 sps:$4 sm:$0xff]  }
  0x6b   :  { %953 = vmatpush1.bf16.msra.mxu0 %v1355_v21  ;;  %v1439_v21 = vld [vmem:[#allocation5 + $0x108] ss:$16 sps:$4 sm:$0xff]  }
  0x6c   :  { %994 = vmatpush1.bf16.msra.mxu1 %v1358_v22  ;;  %954 = vmatprep.subr.bf16.mxu0 %v1363_v23  ;;  %v1442_v22 = vld [vmem:[#allocation5 + $0x308] ss:$16 sps:$4 sm:$0xff]   ;;  %v206_v23 = vld [vmem:[#allocation7] sm:$0xf] }
  0x6d   :  { %995 = vmatprep.subr.bf16.mxu1 %v1366_v24  ;;  %v851_v24 = vrot.slane %v206_v23, %v56_v4 }
  0x6f   :  { %955 = vmatpush1.bf16.msra.mxu0 %v1361_v25  ;;  %v855_v25 = vrot.slane %v206_v23, %v60_v46 }
  0x70   :  { %996 = vmatpush1.bf16.msra.mxu1 %v1364_v26  ;;  %956 = vmatprep.subr.bf16.mxu0 %v1369_v27 }
  0x71   :  { %997 = vmatprep.subr.bf16.mxu1 %v1372_v28 }
  0x73   :  { %957 = vmatpush1.bf16.msra.mxu0 %v1367_v29 }
  0x74   :  { %998 = vmatpush1.bf16.msra.mxu1 %v1370_v30  ;;  %958 = vmatprep.subr.bf16.mxu0 %v1375_v31 }
  0x75   :  { %999 = vmatprep.subr.bf16.mxu1 %v1378_v32 }
  0x77   :  { %959 = vmatpush1.bf16.msra.mxu0 %v1373_v33 }
  0x78   :  { %1000 = vmatpush1.bf16.msra.mxu1 %v1376_v34  ;;  %960 = vmatprep.subr.bf16.mxu0 %v1381_v35 }
  0x79   :  { %1001 = vmatprep.subr.bf16.mxu1 %v1384_v37 }
  0x7b   :  { %961 = vmatpush1.bf16.msra.mxu0 %v1379_v38 }
  0x7c   :  { %1002 = vmatpush1.bf16.msra.mxu1 %v1382_v39  ;;  %962 = vmatprep.subr.bf16.mxu0 %v1387_v41 }
  0x7d   :  { %1003 = vmatprep.subr.bf16.mxu1 %v1390_v42 }
  0x7f   :  { %963 = vmatpush1.bf16.msra.mxu0 %v1385_v43 }
  0x80   :  { %1004 = vmatpush1.bf16.msra.mxu1 %v1388_v44  ;;  %964 = vmatprep.subr.bf16.mxu0 %v1393_v45 }
  0x81   :  { %1005 = vmatprep.subr.bf16.mxu1 %v1396_v48 }
  0x83   :  { %965 = vmatpush1.bf16.msra.mxu0 %v1391_v49 }
  0x84   :  { %1006 = vmatpush1.bf16.msra.mxu1 %v1394_v50  ;;  %966 = vmatprep.subr.bf16.mxu0 %v1399_v51 }
  0x85   :  { %1007 = vmatprep.subr.bf16.mxu1 %v1402_v52 }
  0x87   :  { %967 = vmatpush2.bf16.msra.mxu0 %v1397_v53 }
  0x88   :  { %1008 = vmatpush2.bf16.msra.mxu1 %v1400_v54  ;;  %968 = vmatprep.subr.bf16.mxu0 %v1405_v55 }
  0x89   :  { %1009 = vmatprep.subr.bf16.mxu1 %v1408_v56 }
  0x8b   :  { %969 = vmatpush2.bf16.msra.mxu0 %v1403_v57  ;;  %v859_v57 = vrot.slane %v206_v23, %v64_v5 }
  0x8c   :  { %1010 = vmatpush2.bf16.msra.mxu1 %v1406_v58  ;;  %970 = vmatprep.subr.bf16.mxu0 %v1411_v59  ;;  %v863_v58 = vrot.slane %v206_v23, %v68_v47 }
  0x8d   :  { %1011 = vmatprep.subr.bf16.mxu1 %v1414_v60 }
  0x8f   :  { %971 = vmatpush2.bf16.msra.mxu0 %v1409_v61 }
  0x90   :  { %1012 = vmatpush2.bf16.msra.mxu1 %v1412_v62  ;;  %972 = vmatprep.subr.bf16.mxu0 %v1417_v63 }
  0x91   :  { %1013 = vmatprep.subr.bf16.mxu1 %v1420_v0 }
  0x93   :  { %973 = vmatpush2.bf16.msra.mxu0 %v1415_v1 }
  0x94   :  { %1014 = vmatpush2.bf16.msra.mxu1 %v1418_v2  ;;  %974 = vmatprep.subr.bf16.mxu0 %v1423_v3 }
  0x95   :  { %1015 = vmatprep.subr.bf16.mxu1 %v1426_v6 }
  0x97   :  { %975 = vmatpush2.bf16.msra.mxu0 %v1421_v7 }
  0x98   :  { %1016 = vmatpush2.bf16.msra.mxu1 %v1424_v8  ;;  %976 = vmatprep.subr.bf16.mxu0 %v1429_v9 }
  0x99   :  { %1017 = vmatprep.subr.bf16.mxu1 %v1432_v10 }
  0x9b   :  { %977 = vmatpush2.bf16.msra.mxu0 %v1427_v11 }
  0x9c   :  { %1018 = vmatpush2.bf16.msra.mxu1 %v1430_v12  ;;  %978 = vmatprep.subr.bf16.mxu0 %v1435_v13 }
  0x9d   :  { %1019 = vmatprep.subr.bf16.mxu1 %v1438_v14 }
  0x9f   :  { %979 = vmatpush2.bf16.msra.mxu0 %v1433_v17 }
  0xa0   :  { %1020 = vmatpush2.bf16.msra.mxu1 %v1436_v18  ;;  %980 = vmatprep.subr.bf16.mxu0 %v1441_v19  ;;  %v1544_v19 = vmov 1966171168  }
  0xa1   :  { %1021 = vmatprep.subr.bf16.mxu1 %v1444_v20  ;;  %v1075_v20 = vunpack.c.l.s4 %v1544_v19 }
  0xa3   :  { %981 = vmatpush2.bf16.msra.mxu0 %v1439_v21  ;;  %v1076_v23 = vunpack.c.0.s8 %v1075_v20 }
  0xa4   :  { %1022 = vmatpush2.bf16.msra.mxu1 %v1442_v22 }
  0xa6   :  { %983 = vmatmul.mubr.bf16.vlgmr.msra.gmra.mxu0 %v1590_v15 }
  0xa7   :  { %1024 = vmatmul.mubr.bf16.vlgmr.msra.gmra.mxu1 %v1592_v16 }
 0x126   :  { %v902_v26 = vpop.f32.mrf.mxu0 }
 0x127   :  { %v943_v27 = vpop.f32.mrf.mxu1  ;;  %v903_v28 = vadd.f32 %v902_v26, %v851_v24 }
 0x128   :  { %v904_v29 = vpop.f32.mrf.mxu0 }
 0x129   :  { %v945_v30 = vpop.f32.mrf.mxu1  ;;  %v944_v31 = vadd.f32 %v943_v27, %v903_v28  ;;  %v905_v32 = vadd.f32 %v904_v29, %v855_v25 }
 0x12a   :  { %v906_v33 = vpop.f32.mrf.mxu0 }
 0x12b   :  { %v947_v34 = vpop.f32.mrf.mxu1  ;;  %v1036_v35 = vmul.f32 %v944_v31, %v944_v31  ;;  %v946_v15 = vadd.f32 %v945_v30, %v905_v32  ;;  %v1032_v51 = vmul.f32 0.5, %v944_v31  ;;  %v1079_v30 = vsub.s32 %v1076_v23, %v1576_v40 }
 0x12c   :  { %v907_v37 = vpop.f32.mrf.mxu0 }
 0x12d   :  { %v948_v16 = vpop.f32.mrf.mxu1  ;;  %v1040_v38 = vmul.f32 %v1036_v35, %v944_v31  ;;  %v1037_v39 = vmul.f32 %v946_v15, %v946_v15  ;;  %v1033_v52 = vmul.f32 0.5, %v946_v15 }
 0x12f   :  { %v1044_v41 = vmul.f32 0.044715, %v1040_v38  ;;  %v1041_v4 = vmul.f32 %v1037_v39, %v946_v15 }
 0x131   :  { %v1048_v42 = vadd.f32 %v1044_v41, %v944_v31  ;;  %v1045_v43 = vmul.f32 0.044715, %v1041_v4 }
 0x133   :  { %v1052_v46 = vmul.f32 0.7978846, %v1048_v42  ;;  %v1049_v44 = vadd.f32 %v1045_v43, %v946_v15 }
 0x135   :  { %1445 = vtanh.f32 %v1052_v46  ;;  %v1053_v45 = vmul.f32 0.7978846, %v1049_v44 }
 0x137   :  { %1447 = vtanh.f32 %v1053_v45 }
 0x142   :  { %v1446_v48 = vpop.eup %1445 }
 0x143   :  { %v1060_v49 = vadd.f32 1.0, %v1446_v48 }
 0x144   :  { %v1448_v50 = vpop.eup %1447 }
 0x145   :  { %v1061_v53 = vadd.f32 1.0, %v1448_v50  ;;  %v1064_v54 = vmul.f32 %v1060_v49, %v1032_v51 }
 0x147   :  { %v1065_v55 = vmul.f32 %v1061_v53, %v1033_v52 }
 0x149   :  { %v1072_v56 = vcombine.low %v1064_v54, %v1065_v55 }
 0x14b   :  { %v1080_v32 = vrot.slane %v1072_v56, %v1079_v30 }
 0x166   :  { %v984_v59 = vpop.f32.mrf.mxu0 }
 0x167   :  { %v1025_v60 = vpop.f32.mrf.mxu1  ;;  %v985_v61 = vadd.f32 %v984_v59, %v859_v57 }
 0x168   :  { %v986_v62 = vpop.f32.mrf.mxu0 }
 0x169   :  { %v1027_v63 = vpop.f32.mrf.mxu1  ;;  %v1026_v0 = vadd.f32 %v1025_v60, %v985_v61  ;;  %v987_v1 = vadd.f32 %v986_v62, %v863_v58 }
 0x16a   :  { %v988_v2 = vpop.f32.mrf.mxu0 }
 0x16b   :  { %v1029_v3 = vpop.f32.mrf.mxu1  ;;  %v1038_v6 = vmul.f32 %v1026_v0, %v1026_v0  ;;  %v1028_v7 = vadd.f32 %v1027_v63, %v987_v1  ;;  %v1034_v25 = vmul.f32 0.5, %v1026_v0 }
 0x16c   :  { %v989_v8 = vpop.f32.mrf.mxu0 }
 0x16d   :  { %v1030_v9 = vpop.f32.mrf.mxu1  ;;  %v1042_v10 = vmul.f32 %v1038_v6, %v1026_v0  ;;  %v1039_v11 = vmul.f32 %v1028_v7, %v1028_v7  ;;  %v1035_v26 = vmul.f32 0.5, %v1028_v7 }
 0x16f   :  { %v1046_v12 = vmul.f32 0.044715, %v1042_v10  ;;  %v1043_v5 = vmul.f32 %v1039_v11, %v1028_v7 }
 0x171   :  { %v1050_v13 = vadd.f32 %v1046_v12, %v1026_v0  ;;  %v1047_v14 = vmul.f32 0.044715, %v1043_v5 }
 0x173   :  { %v1054_v47 = vmul.f32 0.7978846, %v1050_v13  ;;  %v1051_v17 = vadd.f32 %v1047_v14, %v1028_v7 }
 0x175   :  { %1449 = vtanh.f32 %v1054_v47  ;;  %v1055_v18 = vmul.f32 0.7978846, %v1051_v17 }
 0x177   :  { %1451 = vtanh.f32 %v1055_v18 }
 0x182   :  { %v1450_v21 = vpop.eup %1449 }
 0x183   :  { %v1062_v22 = vadd.f32 1.0, %v1450_v21 }
 0x184   :  { %v1452_v24 = vpop.eup %1451 }
 0x185   :  { %v1063_v27 = vadd.f32 1.0, %v1452_v24  ;;  %v1066_v28 = vmul.f32 %v1062_v22, %v1034_v25 }
 0x187   :  { %v1067_v29 = vmul.f32 %v1063_v27, %v1035_v26 }
 0x189   :  { %v1073_v31 = vcombine.low %v1066_v28, %v1067_v29 }
 0x18b   :  { %v1087_v33 = vrot.slane %v1073_v31, %v1079_v30 }
 0x18d   :  { %v1088_v34 = vcombine.low %v1080_v32, %v1087_v33 }
 0x18f   :  { %v1095_v35 = vrot.slane %v1088_v34, %v1079_v30 }
 0x191   :  { %1101 = vst.msk [vmem:[#allocation8] sm:$0xf] %vm1099_vm0, %v1095_v35 }
 0x192   :  { %1524 = shalt.err (!%p1521_p5)
}
 0x193   :  { %1111 = dma.vmem_to_hbm [thread:$0]  %s1109_s2, 64, %s1614_s3, [#allocation4]  }
 0x194   :  { %1537 = dma.done.wait [#allocation4], 64  }
 0x195   :  { %1538 = vsyncadd [#allocation4], 4294967232 }
 0x196   :  { %1115 = vsyncpa [#allocation3], 1 }
 0x197   :  { %1116 = vsyncpa [#allocation6], 1 }
 0x198   :  { %1117 = vsyncpa [#allocation4], 1 }

</bundles_post_ra>
